<compile_context>
chip_gen: v7x
topology: tpu7x:2x2x1
jax: 0.10.0
libtpu: 0.0.40
codegen_flags: <defaults>
</compile_context>

<pallas_src>
import jax
import jax.numpy as jnp
from jax import lax
from jax.experimental import pallas as pl
from jax.experimental.pallas import tpu as pltpu

# ---- model hyper-parameters (small, consistent with the module) ----
SYM = 16            # sym_size (forced even by the module)
LATENT = 8          # latent_size (multiple of 8 -> aligned sublane slices)
EFFECT = 8          # effect_size (not used by forward itself)
HIDDEN = 32         # hidden_units
FUSED = 2 * HIDDEN  # fused s+t hidden width
N_COUPLE = 3        # masks.shape[0] // 2
NEG_SLOPE = 0.01    # nn.LeakyReLU default
NORMALIZED_STATE = True
BATCH = 8
OUT_FEATS = SYM + 2 * LATENT   # packed output rows: [y | s | s_next]


def renorm_forward_kernel(
    x_ref, noise_ref,
    cW1, cb1, cW2, cb2, cW3, cb3,      # fused s|t coupling nets, stacked over N_COUPLE
    dW1, db1, dW2, db2, dW3, db3,      # dynamics MLP (zero-padded latent->sym)
    out_ref,                           # (OUT_FEATS, TB) packed [y | s | s_next]
):
    x = x_ref[...]            # (SYM, TB) f32, feature-major
    noise = noise_ref[...]    # (SYM-LATENT, TB) f32 decoder noise

    # Coupling masks hoisted once (column vectors broadcasting over lanes).
    row = lax.broadcasted_iota(jnp.int32, (SYM, 1), 0)
    m1 = (row >= SYM // 2).astype(jnp.float32)    # mask1 = [0..0 1..1] over features
    m2 = 1.0 - m1                                 # mask2
    # module uses masks (mask1, mask2, mask1) for coupling layers 0,1,2
    mask_pairs = ((m1, m2), (m2, m1), (m1, m2))   # (m, 1-m) per layer
    lat_mask = (row < LATENT).astype(jnp.float32)

    def leaky(v):
        # identical to LeakyReLU(0.01) since slope < 1; one mul + one max on the VPU
        return jnp.maximum(v, NEG_SLOPE * v)

    def couple_st(i, z):
        # Fused MLP evaluating both the "s" and "t" nets of coupling layer i.
        # Weights are transposed (out, in); layer is W_T @ z + b with z (in, TB).
        zb = z.astype(jnp.bfloat16)
        h = leaky(jnp.dot(cW1[i], zb, preferred_element_type=jnp.float32) + cb1[i])
        h = leaky(jnp.dot(cW2[i], h.astype(jnp.bfloat16),
                          preferred_element_type=jnp.float32) + cb2[i])
        o = jnp.dot(cW3[i], h.astype(jnp.bfloat16),
                    preferred_element_type=jnp.float32) + cb3[i]     # (2*SYM, TB)
        s_val = jnp.tanh(o[:SYM, :])   # s-net ends in Tanh; sublane slice @0
        t_val = o[SYM:, :]             # t-net no final activation; sublane slice @16
        return s_val, t_val

    # ---------------- encoding:  z = flow.f(x)  ----------------
    z = x
    for i in reversed(range(N_COUPLE)):
        m, om = mask_pairs[i]
        z_ = m * z
        s_val, t_val = couple_st(i, z_)
        # per-term (1-m) masking of s/t is redundant: the outer (1-m) zeroes those rows
        z = om * (z - t_val) * jnp.exp(-s_val) + z_

    if NORMALIZED_STATE:
        s_full = jnp.tanh(z) * lat_mask      # rows >= LATENT zeroed
    else:
        s_full = z * lat_mask

    # ---------------- dynamics:  s_next = tanh(dyn(s) + s)  ----------------
    h = leaky(jnp.dot(dW1[...], s_full.astype(jnp.bfloat16),
                      preferred_element_type=jnp.float32) + db1[...])
    h = leaky(jnp.dot(dW2[...], h.astype(jnp.bfloat16),
                      preferred_element_type=jnp.float32) + db2[...])
    dyn = jnp.dot(dW3[...], h.astype(jnp.bfloat16),
                  preferred_element_type=jnp.float32) + db3[...]
    # dyn is zero beyond LATENT (dW3/db3 zero-padded) and s_full is masked,
    # so no extra lat_mask multiplies are needed; tanh(0)=0 preserves that.
    s_next = dyn + s_full
    if NORMALIZED_STATE:
        s_next = jnp.tanh(s_next)

    # ---------------- decoding:  y = flow.g(concat([s_next, noise]))  ----------------
    xg = jnp.concatenate([s_next[:LATENT, :], noise], axis=0)   # (SYM, TB)
    for i in range(N_COUPLE):
        m, om = mask_pairs[i]
        x_ = xg * m
        s_val, t_val = couple_st(i, x_)
        xg = x_ + om * (xg * jnp.exp(s_val) + t_val)

    # single packed store: [y | s | s_next], lane-dense in the batch dimension
    out_ref[...] = jnp.concatenate(
        [xg, s_full[:LATENT, :], s_next[:LATENT, :]], axis=0)


# ------------------------------ parameter setup (plain JAX glue) ------------------------------
def _linear_t(key, fan_in, fan_out):
    """nn.Linear init, stored transposed: W_T (out, in), b (out, 1)."""
    kw, kb = jax.random.split(key)
    bound = 1.0 / jnp.sqrt(float(fan_in))
    W = jax.random.uniform(kw, (fan_out, fan_in), jnp.float32, -bound, bound)
    b = jax.random.uniform(kb, (fan_out, 1), jnp.float32, -bound, bound)
    return W, b


def make_params(key):
    keys = jax.random.split(key, 32)
    ki = iter(range(32))

    cW1s, cb1s, cW2s, cb2s, cW3s, cb3s = [], [], [], [], [], []
    for _ in range(N_COUPLE):
        sW1, sb1 = _linear_t(keys[next(ki)], SYM, HIDDEN)
        sW2, sb2 = _linear_t(keys[next(ki)], HIDDEN, HIDDEN)
        sW3, sb3 = _linear_t(keys[next(ki)], HIDDEN, SYM)
        tW1, tb1 = _linear_t(keys[next(ki)], SYM, HIDDEN)
        tW2, tb2 = _linear_t(keys[next(ki)], HIDDEN, HIDDEN)
        tW3, tb3 = _linear_t(keys[next(ki)], HIDDEN, SYM)

        # fuse s/t: layer1 stacked rows, layers 2/3 block-diagonal (halves the dot chain)
        W1 = jnp.concatenate([sW1, tW1], axis=0)                      # (2H, SYM)
        b1 = jnp.concatenate([sb1, tb1], axis=0)                      # (2H, 1)
        W2 = jnp.zeros((FUSED, FUSED), jnp.float32)
        W2 = W2.at[:HIDDEN, :HIDDEN].set(sW2).at[HIDDEN:, HIDDEN:].set(tW2)
        b2 = jnp.concatenate([sb2, tb2], axis=0)                      # (2H, 1)
        W3 = jnp.zeros((2 * SYM, FUSED), jnp.float32)
        W3 = W3.at[:SYM, :HIDDEN].set(sW3).at[SYM:, HIDDEN:].set(tW3)
        b3 = jnp.concatenate([sb3, tb3], axis=0)                      # (2*SYM, 1)

        cW1s.append(W1); cb1s.append(b1)
        cW2s.append(W2); cb2s.append(b2)
        cW3s.append(W3); cb3s.append(b3)

    bf16 = jnp.bfloat16
    couple_params = (
        jnp.stack(cW1s).astype(bf16), jnp.stack(cb1s),
        jnp.stack(cW2s).astype(bf16), jnp.stack(cb2s),
        jnp.stack(cW3s).astype(bf16), jnp.stack(cb3s),
    )

    # dynamics MLP: latent -> hidden -> hidden -> latent, zero-padded to SYM width
    dW1, db1 = _linear_t(keys[next(ki)], LATENT, HIDDEN)   # (H, LATENT)
    dW2, db2 = _linear_t(keys[next(ki)], HIDDEN, HIDDEN)   # (H, H)
    dW3, db3 = _linear_t(keys[next(ki)], HIDDEN, LATENT)   # (LATENT, H)
    dW1p = jnp.zeros((HIDDEN, SYM), jnp.float32).at[:, :LATENT].set(dW1)
    dW3p = jnp.zeros((SYM, HIDDEN), jnp.float32).at[:LATENT, :].set(dW3)
    db3p = jnp.zeros((SYM, 1), jnp.float32).at[:LATENT, :].set(db3)
    dyn_params = (dW1p.astype(bf16), db1, dW2.astype(bf16), db2, dW3p.astype(bf16), db3p)

    return couple_params, dyn_params


# ------------------------------ batch tiling (generation-aware) ------------------------------
def _num_tensorcores() -> int:
    try:
        d = jax.devices()[0]
        kind = (getattr(d, "device_kind", "") or "").lower()
        if "v7" in kind:
            return 2
        nc = getattr(d, "num_cores", None)
        if isinstance(nc, int) and nc > 0:
            return nc
    except Exception:
        pass
    return 1


def _plan_batch_tile(B: int):
    """Return (TB, B_pad).  TB is the lane-dim batch tile; B is padded to a multiple."""
    ncores = _num_tensorcores()
    MAX_TB = 2048
    if ncores >= 2 and B > 256:
        # v7x: even number of grid steps >= 2 so both TensorCores get equal work
        tb = 512
        while tb > 128 and -(-B // tb) < 2:
            tb //= 2
        steps = -(-B // tb)
        if steps % 2:
            steps += 1
        return tb, steps * tb
    # single TensorCore (v5e/v6e): maximize the tile; extra grid steps only add overhead
    if B <= MAX_TB:
        return B, B
    tb = MAX_TB
    steps = -(-B // tb)
    return tb, steps * tb


# ------------------------------ pallas_call wrapper ------------------------------
def renorm_forward(x, dec_noise, params):
    """x: (B, SYM) f32; dec_noise: (B, SYM-LATENT) f32 standard-normal decoder noise."""
    couple_params, dyn_params = params
    B = x.shape[0]
    assert x.shape == (B, SYM)
    assert dec_noise.shape == (B, SYM - LATENT)

    TB, B_pad = _plan_batch_tile(B)
    if B_pad != B:
        x = jnp.pad(x, ((0, B_pad - B), (0, 0)))
        dec_noise = jnp.pad(dec_noise, ((0, B_pad - B), (0, 0)))

    # batch-in-lanes layout: (feature, batch)
    x_t = x.T                    # (SYM, B_pad)
    noise_t = dec_noise.T        # (SYM-LATENT, B_pad)

    weights = couple_params + dyn_params

    # constant index_map => Pallas keeps the (tiny) weights resident across grid steps
    def full_spec(a):
        nd = a.ndim
        return pl.BlockSpec(a.shape, lambda i, _nd=nd: (0,) * _nd)

    in_specs = (
        [pl.BlockSpec((SYM, TB), lambda i: (0, i)),
         pl.BlockSpec((SYM - LATENT, TB), lambda i: (0, i))]
        + [full_spec(a) for a in weights]
    )
    out_spec = pl.BlockSpec((OUT_FEATS, TB), lambda i: (0, i))
    out_shape = jax.ShapeDtypeStruct((OUT_FEATS, B_pad), jnp.float32)

    packed = pl.pallas_call(
        renorm_forward_kernel,
        grid=(B_pad // TB,),
        in_specs=in_specs,
        out_specs=out_spec,
        out_shape=out_shape,
        compiler_params=pltpu.CompilerParams(dimension_semantics=("parallel",)),
    )(x_t, noise_t, *weights)

    # match PyTorch return shapes: y (B, SYM), s (B, LATENT), s_next (B, LATENT)
    y = packed[:SYM, :B].T
    s = packed[SYM:SYM + LATENT, :B].T
    s_next = packed[SYM + LATENT:, :B].T
    return y, s, s_next


if __name__ == "__main__":
    key = jax.random.PRNGKey(0)
    kp, kx, kn = jax.random.split(key, 3)

    params = make_params(kp)
    x = jax.random.normal(kx, (BATCH, SYM), jnp.float32)
    # decoding() samples standard-normal noise of width SYM - LATENT (done here, outside the kernel)
    # TODO(synk): in-kernel MultivariateNormal sampling not implemented; noise is generated with jax.random
    dec_noise = jax.random.normal(kn, (BATCH, SYM - LATENT), jnp.float32)

    y, s, s_next = renorm_forward(x, dec_noise, params)
    jax.block_until_ready((y, s, s_next))

    assert y.shape == (BATCH, SYM)
    assert s.shape == (BATCH, LATENT)
    assert s_next.shape == (BATCH, LATENT)
    assert bool(jnp.all(jnp.isfinite(y))) and bool(jnp.all(jnp.isfinite(s)))
    assert bool(jnp.all(jnp.isfinite(s_next)))
    print("KERNEL_OK")
</pallas_src>

<mosaic_0001>
module attributes {stable_mosaic.version = 11 : i64} {
  func.func @renorm_forward_kernel(%arg0: i32, %arg1: memref<16x8xf32, #tpu.memory_space<vmem>>, %arg2: memref<8x8xf32, #tpu.memory_space<vmem>>, %arg3: memref<3x64x16xbf16, #tpu.memory_space<vmem>>, %arg4: memref<3x64x1xf32, #tpu.memory_space<vmem>>, %arg5: memref<3x64x64xbf16, #tpu.memory_space<vmem>>, %arg6: memref<3x64x1xf32, #tpu.memory_space<vmem>>, %arg7: memref<3x32x64xbf16, #tpu.memory_space<vmem>>, %arg8: memref<3x32x1xf32, #tpu.memory_space<vmem>>, %arg9: memref<32x16xbf16, #tpu.memory_space<vmem>>, %arg10: memref<32x1xf32, #tpu.memory_space<vmem>>, %arg11: memref<32x32xbf16, #tpu.memory_space<vmem>>, %arg12: memref<32x1xf32, #tpu.memory_space<vmem>>, %arg13: memref<16x32xbf16, #tpu.memory_space<vmem>>, %arg14: memref<16x1xf32, #tpu.memory_space<vmem>>, %arg15: memref<32x8xf32, #tpu.memory_space<vmem>>) attributes {dimension_semantics = [#tpu.dimension_semantics<parallel>], iteration_bounds = array<i64: 1>, scalar_prefetch = 0 : i64, scratch_operands = 0 : i64, tpu.core_type = #tpu.core_type<tc>, window_params = [{transform_indices = @transform_0, window_bounds = array<i64: 16, 8>}, {transform_indices = @transform_1, window_bounds = array<i64: 8, 8>}, {pipeline_mode = #tpu.pipeline_mode<synchronous>, transform_indices = @transform_2, window_bounds = array<i64: 3, 64, 16>}, {pipeline_mode = #tpu.pipeline_mode<synchronous>, transform_indices = @transform_3, window_bounds = array<i64: 3, 64, 1>}, {pipeline_mode = #tpu.pipeline_mode<synchronous>, transform_indices = @transform_4, window_bounds = array<i64: 3, 64, 64>}, {pipeline_mode = #tpu.pipeline_mode<synchronous>, transform_indices = @transform_5, window_bounds = array<i64: 3, 64, 1>}, {pipeline_mode = #tpu.pipeline_mode<synchronous>, transform_indices = @transform_6, window_bounds = array<i64: 3, 32, 64>}, {pipeline_mode = #tpu.pipeline_mode<synchronous>, transform_indices = @transform_7, window_bounds = array<i64: 3, 32, 1>}, {pipeline_mode = #tpu.pipeline_mode<synchronous>, transform_indices = @transform_8, window_bounds = array<i64: 32, 16>}, {pipeline_mode = #tpu.pipeline_mode<synchronous>, transform_indices = @transform_9, window_bounds = array<i64: 32, 1>}, {pipeline_mode = #tpu.pipeline_mode<synchronous>, transform_indices = @transform_10, window_bounds = array<i64: 32, 32>}, {pipeline_mode = #tpu.pipeline_mode<synchronous>, transform_indices = @transform_11, window_bounds = array<i64: 32, 1>}, {pipeline_mode = #tpu.pipeline_mode<synchronous>, transform_indices = @transform_12, window_bounds = array<i64: 16, 32>}, {pipeline_mode = #tpu.pipeline_mode<synchronous>, transform_indices = @transform_13, window_bounds = array<i64: 16, 1>}, {transform_indices = @transform_14, window_bounds = array<i64: 32, 8>}]} {
    %c0 = arith.constant 0 : index
    %c0_0 = arith.constant 0 : index
    %0 = vector.load %arg1[%c0, %c0_0] : memref<16x8xf32, #tpu.memory_space<vmem>>, vector<16x8xf32>
    %c0_1 = arith.constant 0 : index
    %c0_2 = arith.constant 0 : index
    %1 = vector.load %arg2[%c0_1, %c0_2] : memref<8x8xf32, #tpu.memory_space<vmem>>, vector<8x8xf32>
    %2 = tpu.iota {dimensions = array<i32: 0>} : vector<16x1xi32>
    %c8_i32 = arith.constant 8 : i32
    %3 = vector.broadcast %c8_i32 : i32 to vector<16x1xi32>
    %4 = arith.cmpi sge, %2, %3 : vector<16x1xi32>
    %5 = arith.extui %4 : vector<16x1xi1> to vector<16x1xi32>
    %6 = arith.sitofp %5 : vector<16x1xi32> to vector<16x1xf32>
    %cst = arith.constant 1.000000e+00 : f32
    %7 = vector.broadcast %cst : f32 to vector<16x1xf32>
    %8 = arith.subf %7, %6 : vector<16x1xf32>
    %c8_i32_3 = arith.constant 8 : i32
    %9 = vector.broadcast %c8_i32_3 : i32 to vector<16x1xi32>
    %10 = arith.cmpi slt, %2, %9 : vector<16x1xi32>
    %11 = arith.extui %10 : vector<16x1xi1> to vector<16x1xi32>
    %12 = arith.sitofp %11 : vector<16x1xi32> to vector<16x1xf32>
    %13 = vector.broadcast %6 : vector<16x1xf32> to vector<16x8xf32>
    %14 = arith.mulf %13, %0 : vector<16x8xf32>
    %15 = arith.truncf %14 : vector<16x8xf32> to vector<16x8xbf16>
    %c2 = arith.constant 2 : index
    %c0_4 = arith.constant 0 : index
    %c0_5 = arith.constant 0 : index
    %16 = vector.load %arg3[%c2, %c0_4, %c0_5] : memref<3x64x16xbf16, #tpu.memory_space<vmem>>, vector<1x64x16xbf16>
    %17 = vector.shape_cast %16 : vector<1x64x16xbf16> to vector<64x16xbf16>
    %cst_6 = arith.constant dense<0.000000e+00> : vector<64x8xf32>
    %18 = tpu.matmul %17, %15, %cst_6 {dimension_numbers = #tpu.dot_dimension_numbers<[1], [0], [0], [1], [0, 0, 1, 1], [], []>} : vector<64x16xbf16>, vector<16x8xbf16>, vector<64x8xf32> -> vector<64x8xf32>
    %c2_7 = arith.constant 2 : index
    %c0_8 = arith.constant 0 : index
    %c0_9 = arith.constant 0 : index
    %19 = vector.load %arg4[%c2_7, %c0_8, %c0_9] : memref<3x64x1xf32, #tpu.memory_space<vmem>>, vector<1x64x1xf32>
    %20 = vector.shape_cast %19 : vector<1x64x1xf32> to vector<64x1xf32>
    %21 = vector.broadcast %20 : vector<64x1xf32> to vector<64x8xf32>
    %22 = arith.addf %18, %21 : vector<64x8xf32>
    %cst_10 = arith.constant 0.00999999977 : f32
    %23 = vector.broadcast %cst_10 : f32 to vector<64x8xf32>
    %24 = arith.mulf %23, %22 : vector<64x8xf32>
    %25 = arith.maximumf %22, %24 : vector<64x8xf32>
    %c2_11 = arith.constant 2 : index
    %c0_12 = arith.constant 0 : index
    %c0_13 = arith.constant 0 : index
    %26 = vector.load %arg5[%c2_11, %c0_12, %c0_13] : memref<3x64x64xbf16, #tpu.memory_space<vmem>>, vector<1x64x64xbf16>
    %27 = vector.shape_cast %26 : vector<1x64x64xbf16> to vector<64x64xbf16>
    %28 = arith.truncf %25 : vector<64x8xf32> to vector<64x8xbf16>
    %cst_14 = arith.constant dense<0.000000e+00> : vector<64x8xf32>
    %29 = tpu.matmul %27, %28, %cst_14 {dimension_numbers = #tpu.dot_dimension_numbers<[1], [0], [0], [1], [0, 0, 1, 1], [], []>} : vector<64x64xbf16>, vector<64x8xbf16>, vector<64x8xf32> -> vector<64x8xf32>
    %c2_15 = arith.constant 2 : index
    %c0_16 = arith.constant 0 : index
    %c0_17 = arith.constant 0 : index
    %30 = vector.load %arg6[%c2_15, %c0_16, %c0_17] : memref<3x64x1xf32, #tpu.memory_space<vmem>>, vector<1x64x1xf32>
    %31 = vector.shape_cast %30 : vector<1x64x1xf32> to vector<64x1xf32>
    %32 = vector.broadcast %31 : vector<64x1xf32> to vector<64x8xf32>
    %33 = arith.addf %29, %32 : vector<64x8xf32>
    %cst_18 = arith.constant 0.00999999977 : f32
    %34 = vector.broadcast %cst_18 : f32 to vector<64x8xf32>
    %35 = arith.mulf %34, %33 : vector<64x8xf32>
    %36 = arith.maximumf %33, %35 : vector<64x8xf32>
    %c2_19 = arith.constant 2 : index
    %c0_20 = arith.constant 0 : index
    %c0_21 = arith.constant 0 : index
    %37 = vector.load %arg7[%c2_19, %c0_20, %c0_21] : memref<3x32x64xbf16, #tpu.memory_space<vmem>>, vector<1x32x64xbf16>
    %38 = vector.shape_cast %37 : vector<1x32x64xbf16> to vector<32x64xbf16>
    %39 = arith.truncf %36 : vector<64x8xf32> to vector<64x8xbf16>
    %cst_22 = arith.constant dense<0.000000e+00> : vector<32x8xf32>
    %40 = tpu.matmul %38, %39, %cst_22 {dimension_numbers = #tpu.dot_dimension_numbers<[1], [0], [0], [1], [0, 0, 1, 1], [], []>} : vector<32x64xbf16>, vector<64x8xbf16>, vector<32x8xf32> -> vector<32x8xf32>
    %c2_23 = arith.constant 2 : index
    %c0_24 = arith.constant 0 : index
    %c0_25 = arith.constant 0 : index
    %41 = vector.load %arg8[%c2_23, %c0_24, %c0_25] : memref<3x32x1xf32, #tpu.memory_space<vmem>>, vector<1x32x1xf32>
    %42 = vector.shape_cast %41 : vector<1x32x1xf32> to vector<32x1xf32>
    %43 = vector.broadcast %42 : vector<32x1xf32> to vector<32x8xf32>
    %44 = arith.addf %40, %43 : vector<32x8xf32>
    %45 = vector.extract_strided_slice %44 {offsets = [0, 0], sizes = [16, 8], strides = [1, 1]} : vector<32x8xf32> to vector<16x8xf32>
    %46 = math.tanh %45 : vector<16x8xf32>
    %47 = vector.extract_strided_slice %44 {offsets = [16, 0], sizes = [16, 8], strides = [1, 1]} : vector<32x8xf32> to vector<16x8xf32>
    %48 = arith.subf %0, %47 : vector<16x8xf32>
    %49 = vector.broadcast %8 : vector<16x1xf32> to vector<16x8xf32>
    %50 = arith.mulf %49, %48 : vector<16x8xf32>
    %cst_26 = arith.constant 0.000000e+00 : f32
    %51 = vector.broadcast %cst_26 : f32 to vector<16x8xf32>
    %52 = arith.subf %51, %46 : vector<16x8xf32>
    %53 = math.exp %52 : vector<16x8xf32>
    %54 = arith.mulf %50, %53 : vector<16x8xf32>
    %55 = arith.addf %54, %14 : vector<16x8xf32>
    %56 = vector.broadcast %8 : vector<16x1xf32> to vector<16x8xf32>
    %57 = arith.mulf %56, %55 : vector<16x8xf32>
    %58 = arith.truncf %57 : vector<16x8xf32> to vector<16x8xbf16>
    %c1 = arith.constant 1 : index
    %c0_27 = arith.constant 0 : index
    %c0_28 = arith.constant 0 : index
    %59 = vector.load %arg3[%c1, %c0_27, %c0_28] : memref<3x64x16xbf16, #tpu.memory_space<vmem>>, vector<1x64x16xbf16>
    %60 = vector.shape_cast %59 : vector<1x64x16xbf16> to vector<64x16xbf16>
    %cst_29 = arith.constant dense<0.000000e+00> : vector<64x8xf32>
    %61 = tpu.matmul %60, %58, %cst_29 {dimension_numbers = #tpu.dot_dimension_numbers<[1], [0], [0], [1], [0, 0, 1, 1], [], []>} : vector<64x16xbf16>, vector<16x8xbf16>, vector<64x8xf32> -> vector<64x8xf32>
    %c1_30 = arith.constant 1 : index
    %c0_31 = arith.constant 0 : index
    %c0_32 = arith.constant 0 : index
    %62 = vector.load %arg4[%c1_30, %c0_31, %c0_32] : memref<3x64x1xf32, #tpu.memory_space<vmem>>, vector<1x64x1xf32>
    %63 = vector.shape_cast %62 : vector<1x64x1xf32> to vector<64x1xf32>
    %64 = vector.broadcast %63 : vector<64x1xf32> to vector<64x8xf32>
    %65 = arith.addf %61, %64 : vector<64x8xf32>
    %cst_33 = arith.constant 0.00999999977 : f32
    %66 = vector.broadcast %cst_33 : f32 to vector<64x8xf32>
    %67 = arith.mulf %66, %65 : vector<64x8xf32>
    %68 = arith.maximumf %65, %67 : vector<64x8xf32>
    %c1_34 = arith.constant 1 : index
    %c0_35 = arith.constant 0 : index
    %c0_36 = arith.constant 0 : index
    %69 = vector.load %arg5[%c1_34, %c0_35, %c0_36] : memref<3x64x64xbf16, #tpu.memory_space<vmem>>, vector<1x64x64xbf16>
    %70 = vector.shape_cast %69 : vector<1x64x64xbf16> to vector<64x64xbf16>
    %71 = arith.truncf %68 : vector<64x8xf32> to vector<64x8xbf16>
    %cst_37 = arith.constant dense<0.000000e+00> : vector<64x8xf32>
    %72 = tpu.matmul %70, %71, %cst_37 {dimension_numbers = #tpu.dot_dimension_numbers<[1], [0], [0], [1], [0, 0, 1, 1], [], []>} : vector<64x64xbf16>, vector<64x8xbf16>, vector<64x8xf32> -> vector<64x8xf32>
    %c1_38 = arith.constant 1 : index
    %c0_39 = arith.constant 0 : index
    %c0_40 = arith.constant 0 : index
    %73 = vector.load %arg6[%c1_38, %c0_39, %c0_40] : memref<3x64x1xf32, #tpu.memory_space<vmem>>, vector<1x64x1xf32>
    %74 = vector.shape_cast %73 : vector<1x64x1xf32> to vector<64x1xf32>
    %75 = vector.broadcast %74 : vector<64x1xf32> to vector<64x8xf32>
    %76 = arith.addf %72, %75 : vector<64x8xf32>
    %cst_41 = arith.constant 0.00999999977 : f32
    %77 = vector.broadcast %cst_41 : f32 to vector<64x8xf32>
    %78 = arith.mulf %77, %76 : vector<64x8xf32>
    %79 = arith.maximumf %76, %78 : vector<64x8xf32>
    %c1_42 = arith.constant 1 : index
    %c0_43 = arith.constant 0 : index
    %c0_44 = arith.constant 0 : index
    %80 = vector.load %arg7[%c1_42, %c0_43, %c0_44] : memref<3x32x64xbf16, #tpu.memory_space<vmem>>, vector<1x32x64xbf16>
    %81 = vector.shape_cast %80 : vector<1x32x64xbf16> to vector<32x64xbf16>
    %82 = arith.truncf %79 : vector<64x8xf32> to vector<64x8xbf16>
    %cst_45 = arith.constant dense<0.000000e+00> : vector<32x8xf32>
    %83 = tpu.matmul %81, %82, %cst_45 {dimension_numbers = #tpu.dot_dimension_numbers<[1], [0], [0], [1], [0, 0, 1, 1], [], []>} : vector<32x64xbf16>, vector<64x8xbf16>, vector<32x8xf32> -> vector<32x8xf32>
    %c1_46 = arith.constant 1 : index
    %c0_47 = arith.constant 0 : index
    %c0_48 = arith.constant 0 : index
    %84 = vector.load %arg8[%c1_46, %c0_47, %c0_48] : memref<3x32x1xf32, #tpu.memory_space<vmem>>, vector<1x32x1xf32>
    %85 = vector.shape_cast %84 : vector<1x32x1xf32> to vector<32x1xf32>
    %86 = vector.broadcast %85 : vector<32x1xf32> to vector<32x8xf32>
    %87 = arith.addf %83, %86 : vector<32x8xf32>
    %88 = vector.extract_strided_slice %87 {offsets = [0, 0], sizes = [16, 8], strides = [1, 1]} : vector<32x8xf32> to vector<16x8xf32>
    %89 = math.tanh %88 : vector<16x8xf32>
    %90 = vector.extract_strided_slice %87 {offsets = [16, 0], sizes = [16, 8], strides = [1, 1]} : vector<32x8xf32> to vector<16x8xf32>
    %91 = arith.subf %55, %90 : vector<16x8xf32>
    %92 = vector.broadcast %6 : vector<16x1xf32> to vector<16x8xf32>
    %93 = arith.mulf %92, %91 : vector<16x8xf32>
    %cst_49 = arith.constant 0.000000e+00 : f32
    %94 = vector.broadcast %cst_49 : f32 to vector<16x8xf32>
    %95 = arith.subf %94, %89 : vector<16x8xf32>
    %96 = math.exp %95 : vector<16x8xf32>
    %97 = arith.mulf %93, %96 : vector<16x8xf32>
    %98 = arith.addf %97, %57 : vector<16x8xf32>
    %99 = vector.broadcast %6 : vector<16x1xf32> to vector<16x8xf32>
    %100 = arith.mulf %99, %98 : vector<16x8xf32>
    %101 = arith.truncf %100 : vector<16x8xf32> to vector<16x8xbf16>
    %c0_50 = arith.constant 0 : index
    %c0_51 = arith.constant 0 : index
    %c0_52 = arith.constant 0 : index
    %102 = vector.load %arg3[%c0_50, %c0_51, %c0_52] : memref<3x64x16xbf16, #tpu.memory_space<vmem>>, vector<1x64x16xbf16>
    %103 = vector.shape_cast %102 : vector<1x64x16xbf16> to vector<64x16xbf16>
    %cst_53 = arith.constant dense<0.000000e+00> : vector<64x8xf32>
    %104 = tpu.matmul %103, %101, %cst_53 {dimension_numbers = #tpu.dot_dimension_numbers<[1], [0], [0], [1], [0, 0, 1, 1], [], []>} : vector<64x16xbf16>, vector<16x8xbf16>, vector<64x8xf32> -> vector<64x8xf32>
    %c0_54 = arith.constant 0 : index
    %c0_55 = arith.constant 0 : index
    %c0_56 = arith.constant 0 : index
    %105 = vector.load %arg4[%c0_54, %c0_55, %c0_56] : memref<3x64x1xf32, #tpu.memory_space<vmem>>, vector<1x64x1xf32>
    %106 = vector.shape_cast %105 : vector<1x64x1xf32> to vector<64x1xf32>
    %107 = vector.broadcast %106 : vector<64x1xf32> to vector<64x8xf32>
    %108 = arith.addf %104, %107 : vector<64x8xf32>
    %cst_57 = arith.constant 0.00999999977 : f32
    %109 = vector.broadcast %cst_57 : f32 to vector<64x8xf32>
    %110 = arith.mulf %109, %108 : vector<64x8xf32>
    %111 = arith.maximumf %108, %110 : vector<64x8xf32>
    %c0_58 = arith.constant 0 : index
    %c0_59 = arith.constant 0 : index
    %c0_60 = arith.constant 0 : index
    %112 = vector.load %arg5[%c0_58, %c0_59, %c0_60] : memref<3x64x64xbf16, #tpu.memory_space<vmem>>, vector<1x64x64xbf16>
    %113 = vector.shape_cast %112 : vector<1x64x64xbf16> to vector<64x64xbf16>
    %114 = arith.truncf %111 : vector<64x8xf32> to vector<64x8xbf16>
    %cst_61 = arith.constant dense<0.000000e+00> : vector<64x8xf32>
    %115 = tpu.matmul %113, %114, %cst_61 {dimension_numbers = #tpu.dot_dimension_numbers<[1], [0], [0], [1], [0, 0, 1, 1], [], []>} : vector<64x64xbf16>, vector<64x8xbf16>, vector<64x8xf32> -> vector<64x8xf32>
    %c0_62 = arith.constant 0 : index
    %c0_63 = arith.constant 0 : index
    %c0_64 = arith.constant 0 : index
    %116 = vector.load %arg6[%c0_62, %c0_63, %c0_64] : memref<3x64x1xf32, #tpu.memory_space<vmem>>, vector<1x64x1xf32>
    %117 = vector.shape_cast %116 : vector<1x64x1xf32> to vector<64x1xf32>
    %118 = vector.broadcast %117 : vector<64x1xf32> to vector<64x8xf32>
    %119 = arith.addf %115, %118 : vector<64x8xf32>
    %cst_65 = arith.constant 0.00999999977 : f32
    %120 = vector.broadcast %cst_65 : f32 to vector<64x8xf32>
    %121 = arith.mulf %120, %119 : vector<64x8xf32>
    %122 = arith.maximumf %119, %121 : vector<64x8xf32>
    %c0_66 = arith.constant 0 : index
    %c0_67 = arith.constant 0 : index
    %c0_68 = arith.constant 0 : index
    %123 = vector.load %arg7[%c0_66, %c0_67, %c0_68] : memref<3x32x64xbf16, #tpu.memory_space<vmem>>, vector<1x32x64xbf16>
    %124 = vector.shape_cast %123 : vector<1x32x64xbf16> to vector<32x64xbf16>
    %125 = arith.truncf %122 : vector<64x8xf32> to vector<64x8xbf16>
    %cst_69 = arith.constant dense<0.000000e+00> : vector<32x8xf32>
    %126 = tpu.matmul %124, %125, %cst_69 {dimension_numbers = #tpu.dot_dimension_numbers<[1], [0], [0], [1], [0, 0, 1, 1], [], []>} : vector<32x64xbf16>, vector<64x8xbf16>, vector<32x8xf32> -> vector<32x8xf32>
    %c0_70 = arith.constant 0 : index
    %c0_71 = arith.constant 0 : index
    %c0_72 = arith.constant 0 : index
    %127 = vector.load %arg8[%c0_70, %c0_71, %c0_72] : memref<3x32x1xf32, #tpu.memory_space<vmem>>, vector<1x32x1xf32>
    %128 = vector.shape_cast %127 : vector<1x32x1xf32> to vector<32x1xf32>
    %129 = vector.broadcast %128 : vector<32x1xf32> to vector<32x8xf32>
    %130 = arith.addf %126, %129 : vector<32x8xf32>
    %131 = vector.extract_strided_slice %130 {offsets = [0, 0], sizes = [16, 8], strides = [1, 1]} : vector<32x8xf32> to vector<16x8xf32>
    %132 = math.tanh %131 : vector<16x8xf32>
    %133 = vector.extract_strided_slice %130 {offsets = [16, 0], sizes = [16, 8], strides = [1, 1]} : vector<32x8xf32> to vector<16x8xf32>
    %134 = arith.subf %98, %133 : vector<16x8xf32>
    %135 = vector.broadcast %8 : vector<16x1xf32> to vector<16x8xf32>
    %136 = arith.mulf %135, %134 : vector<16x8xf32>
    %cst_73 = arith.constant 0.000000e+00 : f32
    %137 = vector.broadcast %cst_73 : f32 to vector<16x8xf32>
    %138 = arith.subf %137, %132 : vector<16x8xf32>
    %139 = math.exp %138 : vector<16x8xf32>
    %140 = arith.mulf %136, %139 : vector<16x8xf32>
    %141 = arith.addf %140, %100 : vector<16x8xf32>
    %142 = math.tanh %141 : vector<16x8xf32>
    %143 = vector.broadcast %12 : vector<16x1xf32> to vector<16x8xf32>
    %144 = arith.mulf %142, %143 : vector<16x8xf32>
    %c0_74 = arith.constant 0 : index
    %c0_75 = arith.constant 0 : index
    %145 = vector.load %arg9[%c0_74, %c0_75] : memref<32x16xbf16, #tpu.memory_space<vmem>>, vector<32x16xbf16>
    %146 = arith.truncf %144 : vector<16x8xf32> to vector<16x8xbf16>
    %cst_76 = arith.constant dense<0.000000e+00> : vector<32x8xf32>
    %147 = tpu.matmul %145, %146, %cst_76 {dimension_numbers = #tpu.dot_dimension_numbers<[1], [0], [0], [1], [0, 0, 1, 1], [], []>} : vector<32x16xbf16>, vector<16x8xbf16>, vector<32x8xf32> -> vector<32x8xf32>
    %c0_77 = arith.constant 0 : index
    %c0_78 = arith.constant 0 : index
    %148 = vector.load %arg10[%c0_77, %c0_78] : memref<32x1xf32, #tpu.memory_space<vmem>>, vector<32x1xf32>
    %149 = vector.broadcast %148 : vector<32x1xf32> to vector<32x8xf32>
    %150 = arith.addf %147, %149 : vector<32x8xf32>
    %cst_79 = arith.constant 0.00999999977 : f32
    %151 = vector.broadcast %cst_79 : f32 to vector<32x8xf32>
    %152 = arith.mulf %151, %150 : vector<32x8xf32>
    %153 = arith.maximumf %150, %152 : vector<32x8xf32>
    %c0_80 = arith.constant 0 : index
    %c0_81 = arith.constant 0 : index
    %154 = vector.load %arg11[%c0_80, %c0_81] : memref<32x32xbf16, #tpu.memory_space<vmem>>, vector<32x32xbf16>
    %155 = arith.truncf %153 : vector<32x8xf32> to vector<32x8xbf16>
    %cst_82 = arith.constant dense<0.000000e+00> : vector<32x8xf32>
    %156 = tpu.matmul %154, %155, %cst_82 {dimension_numbers = #tpu.dot_dimension_numbers<[1], [0], [0], [1], [0, 0, 1, 1], [], []>} : vector<32x32xbf16>, vector<32x8xbf16>, vector<32x8xf32> -> vector<32x8xf32>
    %c0_83 = arith.constant 0 : index
    %c0_84 = arith.constant 0 : index
    %157 = vector.load %arg12[%c0_83, %c0_84] : memref<32x1xf32, #tpu.memory_space<vmem>>, vector<32x1xf32>
    %158 = vector.broadcast %157 : vector<32x1xf32> to vector<32x8xf32>
    %159 = arith.addf %156, %158 : vector<32x8xf32>
    %cst_85 = arith.constant 0.00999999977 : f32
    %160 = vector.broadcast %cst_85 : f32 to vector<32x8xf32>
    %161 = arith.mulf %160, %159 : vector<32x8xf32>
    %162 = arith.maximumf %159, %161 : vector<32x8xf32>
    %c0_86 = arith.constant 0 : index
    %c0_87 = arith.constant 0 : index
    %163 = vector.load %arg13[%c0_86, %c0_87] : memref<16x32xbf16, #tpu.memory_space<vmem>>, vector<16x32xbf16>
    %164 = arith.truncf %162 : vector<32x8xf32> to vector<32x8xbf16>
    %cst_88 = arith.constant dense<0.000000e+00> : vector<16x8xf32>
    %165 = tpu.matmul %163, %164, %cst_88 {dimension_numbers = #tpu.dot_dimension_numbers<[1], [0], [0], [1], [0, 0, 1, 1], [], []>} : vector<16x32xbf16>, vector<32x8xbf16>, vector<16x8xf32> -> vector<16x8xf32>
    %c0_89 = arith.constant 0 : index
    %c0_90 = arith.constant 0 : index
    %166 = vector.load %arg14[%c0_89, %c0_90] : memref<16x1xf32, #tpu.memory_space<vmem>>, vector<16x1xf32>
    %167 = vector.broadcast %166 : vector<16x1xf32> to vector<16x8xf32>
    %168 = arith.addf %165, %167 : vector<16x8xf32>
    %169 = arith.addf %168, %144 : vector<16x8xf32>
    %170 = math.tanh %169 : vector<16x8xf32>
    %171 = vector.extract_strided_slice %170 {offsets = [0, 0], sizes = [8, 8], strides = [1, 1]} : vector<16x8xf32> to vector<8x8xf32>
    %172 = tpu.concatenate %171, %1 in 0 : vector<8x8xf32>, vector<8x8xf32> -> vector<16x8xf32>
    %173 = vector.broadcast %6 : vector<16x1xf32> to vector<16x8xf32>
    %174 = arith.mulf %172, %173 : vector<16x8xf32>
    %175 = arith.truncf %174 : vector<16x8xf32> to vector<16x8xbf16>
    %c0_91 = arith.constant 0 : index
    %c0_92 = arith.constant 0 : index
    %c0_93 = arith.constant 0 : index
    %176 = vector.load %arg3[%c0_91, %c0_92, %c0_93] : memref<3x64x16xbf16, #tpu.memory_space<vmem>>, vector<1x64x16xbf16>
    %177 = vector.shape_cast %176 : vector<1x64x16xbf16> to vector<64x16xbf16>
    %cst_94 = arith.constant dense<0.000000e+00> : vector<64x8xf32>
    %178 = tpu.matmul %177, %175, %cst_94 {dimension_numbers = #tpu.dot_dimension_numbers<[1], [0], [0], [1], [0, 0, 1, 1], [], []>} : vector<64x16xbf16>, vector<16x8xbf16>, vector<64x8xf32> -> vector<64x8xf32>
    %c0_95 = arith.constant 0 : index
    %c0_96 = arith.constant 0 : index
    %c0_97 = arith.constant 0 : index
    %179 = vector.load %arg4[%c0_95, %c0_96, %c0_97] : memref<3x64x1xf32, #tpu.memory_space<vmem>>, vector<1x64x1xf32>
    %180 = vector.shape_cast %179 : vector<1x64x1xf32> to vector<64x1xf32>
    %181 = vector.broadcast %180 : vector<64x1xf32> to vector<64x8xf32>
    %182 = arith.addf %178, %181 : vector<64x8xf32>
    %cst_98 = arith.constant 0.00999999977 : f32
    %183 = vector.broadcast %cst_98 : f32 to vector<64x8xf32>
    %184 = arith.mulf %183, %182 : vector<64x8xf32>
    %185 = arith.maximumf %182, %184 : vector<64x8xf32>
    %c0_99 = arith.constant 0 : index
    %c0_100 = arith.constant 0 : index
    %c0_101 = arith.constant 0 : index
    %186 = vector.load %arg5[%c0_99, %c0_100, %c0_101] : memref<3x64x64xbf16, #tpu.memory_space<vmem>>, vector<1x64x64xbf16>
    %187 = vector.shape_cast %186 : vector<1x64x64xbf16> to vector<64x64xbf16>
    %188 = arith.truncf %185 : vector<64x8xf32> to vector<64x8xbf16>
    %cst_102 = arith.constant dense<0.000000e+00> : vector<64x8xf32>
    %189 = tpu.matmul %187, %188, %cst_102 {dimension_numbers = #tpu.dot_dimension_numbers<[1], [0], [0], [1], [0, 0, 1, 1], [], []>} : vector<64x64xbf16>, vector<64x8xbf16>, vector<64x8xf32> -> vector<64x8xf32>
    %c0_103 = arith.constant 0 : index
    %c0_104 = arith.constant 0 : index
    %c0_105 = arith.constant 0 : index
    %190 = vector.load %arg6[%c0_103, %c0_104, %c0_105] : memref<3x64x1xf32, #tpu.memory_space<vmem>>, vector<1x64x1xf32>
    %191 = vector.shape_cast %190 : vector<1x64x1xf32> to vector<64x1xf32>
    %192 = vector.broadcast %191 : vector<64x1xf32> to vector<64x8xf32>
    %193 = arith.addf %189, %192 : vector<64x8xf32>
    %cst_106 = arith.constant 0.00999999977 : f32
    %194 = vector.broadcast %cst_106 : f32 to vector<64x8xf32>
    %195 = arith.mulf %194, %193 : vector<64x8xf32>
    %196 = arith.maximumf %193, %195 : vector<64x8xf32>
    %c0_107 = arith.constant 0 : index
    %c0_108 = arith.constant 0 : index
    %c0_109 = arith.constant 0 : index
    %197 = vector.load %arg7[%c0_107, %c0_108, %c0_109] : memref<3x32x64xbf16, #tpu.memory_space<vmem>>, vector<1x32x64xbf16>
    %198 = vector.shape_cast %197 : vector<1x32x64xbf16> to vector<32x64xbf16>
    %199 = arith.truncf %196 : vector<64x8xf32> to vector<64x8xbf16>
    %cst_110 = arith.constant dense<0.000000e+00> : vector<32x8xf32>
    %200 = tpu.matmul %198, %199, %cst_110 {dimension_numbers = #tpu.dot_dimension_numbers<[1], [0], [0], [1], [0, 0, 1, 1], [], []>} : vector<32x64xbf16>, vector<64x8xbf16>, vector<32x8xf32> -> vector<32x8xf32>
    %c0_111 = arith.constant 0 : index
    %c0_112 = arith.constant 0 : index
    %c0_113 = arith.constant 0 : index
    %201 = vector.load %arg8[%c0_111, %c0_112, %c0_113] : memref<3x32x1xf32, #tpu.memory_space<vmem>>, vector<1x32x1xf32>
    %202 = vector.shape_cast %201 : vector<1x32x1xf32> to vector<32x1xf32>
    %203 = vector.broadcast %202 : vector<32x1xf32> to vector<32x8xf32>
    %204 = arith.addf %200, %203 : vector<32x8xf32>
    %205 = vector.extract_strided_slice %204 {offsets = [0, 0], sizes = [16, 8], strides = [1, 1]} : vector<32x8xf32> to vector<16x8xf32>
    %206 = math.tanh %205 : vector<16x8xf32>
    %207 = vector.extract_strided_slice %204 {offsets = [16, 0], sizes = [16, 8], strides = [1, 1]} : vector<32x8xf32> to vector<16x8xf32>
    %208 = math.exp %206 : vector<16x8xf32>
    %209 = arith.mulf %172, %208 : vector<16x8xf32>
    %210 = arith.addf %209, %207 : vector<16x8xf32>
    %211 = vector.broadcast %8 : vector<16x1xf32> to vector<16x8xf32>
    %212 = arith.mulf %211, %210 : vector<16x8xf32>
    %213 = arith.addf %174, %212 : vector<16x8xf32>
    %214 = vector.broadcast %8 : vector<16x1xf32> to vector<16x8xf32>
    %215 = arith.mulf %213, %214 : vector<16x8xf32>
    %216 = arith.truncf %215 : vector<16x8xf32> to vector<16x8xbf16>
    %c1_114 = arith.constant 1 : index
    %c0_115 = arith.constant 0 : index
    %c0_116 = arith.constant 0 : index
    %217 = vector.load %arg3[%c1_114, %c0_115, %c0_116] : memref<3x64x16xbf16, #tpu.memory_space<vmem>>, vector<1x64x16xbf16>
    %218 = vector.shape_cast %217 : vector<1x64x16xbf16> to vector<64x16xbf16>
    %cst_117 = arith.constant dense<0.000000e+00> : vector<64x8xf32>
    %219 = tpu.matmul %218, %216, %cst_117 {dimension_numbers = #tpu.dot_dimension_numbers<[1], [0], [0], [1], [0, 0, 1, 1], [], []>} : vector<64x16xbf16>, vector<16x8xbf16>, vector<64x8xf32> -> vector<64x8xf32>
    %c1_118 = arith.constant 1 : index
    %c0_119 = arith.constant 0 : index
    %c0_120 = arith.constant 0 : index
    %220 = vector.load %arg4[%c1_118, %c0_119, %c0_120] : memref<3x64x1xf32, #tpu.memory_space<vmem>>, vector<1x64x1xf32>
    %221 = vector.shape_cast %220 : vector<1x64x1xf32> to vector<64x1xf32>
    %222 = vector.broadcast %221 : vector<64x1xf32> to vector<64x8xf32>
    %223 = arith.addf %219, %222 : vector<64x8xf32>
    %cst_121 = arith.constant 0.00999999977 : f32
    %224 = vector.broadcast %cst_121 : f32 to vector<64x8xf32>
    %225 = arith.mulf %224, %223 : vector<64x8xf32>
    %226 = arith.maximumf %223, %225 : vector<64x8xf32>
    %c1_122 = arith.constant 1 : index
    %c0_123 = arith.constant 0 : index
    %c0_124 = arith.constant 0 : index
    %227 = vector.load %arg5[%c1_122, %c0_123, %c0_124] : memref<3x64x64xbf16, #tpu.memory_space<vmem>>, vector<1x64x64xbf16>
    %228 = vector.shape_cast %227 : vector<1x64x64xbf16> to vector<64x64xbf16>
    %229 = arith.truncf %226 : vector<64x8xf32> to vector<64x8xbf16>
    %cst_125 = arith.constant dense<0.000000e+00> : vector<64x8xf32>
    %230 = tpu.matmul %228, %229, %cst_125 {dimension_numbers = #tpu.dot_dimension_numbers<[1], [0], [0], [1], [0, 0, 1, 1], [], []>} : vector<64x64xbf16>, vector<64x8xbf16>, vector<64x8xf32> -> vector<64x8xf32>
    %c1_126 = arith.constant 1 : index
    %c0_127 = arith.constant 0 : index
    %c0_128 = arith.constant 0 : index
    %231 = vector.load %arg6[%c1_126, %c0_127, %c0_128] : memref<3x64x1xf32, #tpu.memory_space<vmem>>, vector<1x64x1xf32>
    %232 = vector.shape_cast %231 : vector<1x64x1xf32> to vector<64x1xf32>
    %233 = vector.broadcast %232 : vector<64x1xf32> to vector<64x8xf32>
    %234 = arith.addf %230, %233 : vector<64x8xf32>
    %cst_129 = arith.constant 0.00999999977 : f32
    %235 = vector.broadcast %cst_129 : f32 to vector<64x8xf32>
    %236 = arith.mulf %235, %234 : vector<64x8xf32>
    %237 = arith.maximumf %234, %236 : vector<64x8xf32>
    %c1_130 = arith.constant 1 : index
    %c0_131 = arith.constant 0 : index
    %c0_132 = arith.constant 0 : index
    %238 = vector.load %arg7[%c1_130, %c0_131, %c0_132] : memref<3x32x64xbf16, #tpu.memory_space<vmem>>, vector<1x32x64xbf16>
    %239 = vector.shape_cast %238 : vector<1x32x64xbf16> to vector<32x64xbf16>
    %240 = arith.truncf %237 : vector<64x8xf32> to vector<64x8xbf16>
    %cst_133 = arith.constant dense<0.000000e+00> : vector<32x8xf32>
    %241 = tpu.matmul %239, %240, %cst_133 {dimension_numbers = #tpu.dot_dimension_numbers<[1], [0], [0], [1], [0, 0, 1, 1], [], []>} : vector<32x64xbf16>, vector<64x8xbf16>, vector<32x8xf32> -> vector<32x8xf32>
    %c1_134 = arith.constant 1 : index
    %c0_135 = arith.constant 0 : index
    %c0_136 = arith.constant 0 : index
    %242 = vector.load %arg8[%c1_134, %c0_135, %c0_136] : memref<3x32x1xf32, #tpu.memory_space<vmem>>, vector<1x32x1xf32>
    %243 = vector.shape_cast %242 : vector<1x32x1xf32> to vector<32x1xf32>
    %244 = vector.broadcast %243 : vector<32x1xf32> to vector<32x8xf32>
    %245 = arith.addf %241, %244 : vector<32x8xf32>
    %246 = vector.extract_strided_slice %245 {offsets = [0, 0], sizes = [16, 8], strides = [1, 1]} : vector<32x8xf32> to vector<16x8xf32>
    %247 = math.tanh %246 : vector<16x8xf32>
    %248 = vector.extract_strided_slice %245 {offsets = [16, 0], sizes = [16, 8], strides = [1, 1]} : vector<32x8xf32> to vector<16x8xf32>
    %249 = math.exp %247 : vector<16x8xf32>
    %250 = arith.mulf %213, %249 : vector<16x8xf32>
    %251 = arith.addf %250, %248 : vector<16x8xf32>
    %252 = vector.broadcast %6 : vector<16x1xf32> to vector<16x8xf32>
    %253 = arith.mulf %252, %251 : vector<16x8xf32>
    %254 = arith.addf %215, %253 : vector<16x8xf32>
    %255 = vector.broadcast %6 : vector<16x1xf32> to vector<16x8xf32>
    %256 = arith.mulf %254, %255 : vector<16x8xf32>
    %257 = arith.truncf %256 : vector<16x8xf32> to vector<16x8xbf16>
    %c2_137 = arith.constant 2 : index
    %c0_138 = arith.constant 0 : index
    %c0_139 = arith.constant 0 : index
    %258 = vector.load %arg3[%c2_137, %c0_138, %c0_139] : memref<3x64x16xbf16, #tpu.memory_space<vmem>>, vector<1x64x16xbf16>
    %259 = vector.shape_cast %258 : vector<1x64x16xbf16> to vector<64x16xbf16>
    %cst_140 = arith.constant dense<0.000000e+00> : vector<64x8xf32>
    %260 = tpu.matmul %259, %257, %cst_140 {dimension_numbers = #tpu.dot_dimension_numbers<[1], [0], [0], [1], [0, 0, 1, 1], [], []>} : vector<64x16xbf16>, vector<16x8xbf16>, vector<64x8xf32> -> vector<64x8xf32>
    %c2_141 = arith.constant 2 : index
    %c0_142 = arith.constant 0 : index
    %c0_143 = arith.constant 0 : index
    %261 = vector.load %arg4[%c2_141, %c0_142, %c0_143] : memref<3x64x1xf32, #tpu.memory_space<vmem>>, vector<1x64x1xf32>
    %262 = vector.shape_cast %261 : vector<1x64x1xf32> to vector<64x1xf32>
    %263 = vector.broadcast %262 : vector<64x1xf32> to vector<64x8xf32>
    %264 = arith.addf %260, %263 : vector<64x8xf32>
    %cst_144 = arith.constant 0.00999999977 : f32
    %265 = vector.broadcast %cst_144 : f32 to vector<64x8xf32>
    %266 = arith.mulf %265, %264 : vector<64x8xf32>
    %267 = arith.maximumf %264, %266 : vector<64x8xf32>
    %c2_145 = arith.constant 2 : index
    %c0_146 = arith.constant 0 : index
    %c0_147 = arith.constant 0 : index
    %268 = vector.load %arg5[%c2_145, %c0_146, %c0_147] : memref<3x64x64xbf16, #tpu.memory_space<vmem>>, vector<1x64x64xbf16>
    %269 = vector.shape_cast %268 : vector<1x64x64xbf16> to vector<64x64xbf16>
    %270 = arith.truncf %267 : vector<64x8xf32> to vector<64x8xbf16>
    %cst_148 = arith.constant dense<0.000000e+00> : vector<64x8xf32>
    %271 = tpu.matmul %269, %270, %cst_148 {dimension_numbers = #tpu.dot_dimension_numbers<[1], [0], [0], [1], [0, 0, 1, 1], [], []>} : vector<64x64xbf16>, vector<64x8xbf16>, vector<64x8xf32> -> vector<64x8xf32>
    %c2_149 = arith.constant 2 : index
    %c0_150 = arith.constant 0 : index
    %c0_151 = arith.constant 0 : index
    %272 = vector.load %arg6[%c2_149, %c0_150, %c0_151] : memref<3x64x1xf32, #tpu.memory_space<vmem>>, vector<1x64x1xf32>
    %273 = vector.shape_cast %272 : vector<1x64x1xf32> to vector<64x1xf32>
    %274 = vector.broadcast %273 : vector<64x1xf32> to vector<64x8xf32>
    %275 = arith.addf %271, %274 : vector<64x8xf32>
    %cst_152 = arith.constant 0.00999999977 : f32
    %276 = vector.broadcast %cst_152 : f32 to vector<64x8xf32>
    %277 = arith.mulf %276, %275 : vector<64x8xf32>
    %278 = arith.maximumf %275, %277 : vector<64x8xf32>
    %c2_153 = arith.constant 2 : index
    %c0_154 = arith.constant 0 : index
    %c0_155 = arith.constant 0 : index
    %279 = vector.load %arg7[%c2_153, %c0_154, %c0_155] : memref<3x32x64xbf16, #tpu.memory_space<vmem>>, vector<1x32x64xbf16>
    %280 = vector.shape_cast %279 : vector<1x32x64xbf16> to vector<32x64xbf16>
    %281 = arith.truncf %278 : vector<64x8xf32> to vector<64x8xbf16>
    %cst_156 = arith.constant dense<0.000000e+00> : vector<32x8xf32>
    %282 = tpu.matmul %280, %281, %cst_156 {dimension_numbers = #tpu.dot_dimension_numbers<[1], [0], [0], [1], [0, 0, 1, 1], [], []>} : vector<32x64xbf16>, vector<64x8xbf16>, vector<32x8xf32> -> vector<32x8xf32>
    %c2_157 = arith.constant 2 : index
    %c0_158 = arith.constant 0 : index
    %c0_159 = arith.constant 0 : index
    %283 = vector.load %arg8[%c2_157, %c0_158, %c0_159] : memref<3x32x1xf32, #tpu.memory_space<vmem>>, vector<1x32x1xf32>
    %284 = vector.shape_cast %283 : vector<1x32x1xf32> to vector<32x1xf32>
    %285 = vector.broadcast %284 : vector<32x1xf32> to vector<32x8xf32>
    %286 = arith.addf %282, %285 : vector<32x8xf32>
    %287 = vector.extract_strided_slice %286 {offsets = [0, 0], sizes = [16, 8], strides = [1, 1]} : vector<32x8xf32> to vector<16x8xf32>
    %288 = math.tanh %287 : vector<16x8xf32>
    %289 = vector.extract_strided_slice %286 {offsets = [16, 0], sizes = [16, 8], strides = [1, 1]} : vector<32x8xf32> to vector<16x8xf32>
    %290 = math.exp %288 : vector<16x8xf32>
    %291 = arith.mulf %254, %290 : vector<16x8xf32>
    %292 = arith.addf %291, %289 : vector<16x8xf32>
    %293 = vector.broadcast %8 : vector<16x1xf32> to vector<16x8xf32>
    %294 = arith.mulf %293, %292 : vector<16x8xf32>
    %295 = arith.addf %256, %294 : vector<16x8xf32>
    %296 = vector.extract_strided_slice %144 {offsets = [0, 0], sizes = [8, 8], strides = [1, 1]} : vector<16x8xf32> to vector<8x8xf32>
    %297 = vector.extract_strided_slice %170 {offsets = [0, 0], sizes = [8, 8], strides = [1, 1]} : vector<16x8xf32> to vector<8x8xf32>
    %298 = tpu.concatenate %295, %296, %297 in 0 : vector<16x8xf32>, vector<8x8xf32>, vector<8x8xf32> -> vector<32x8xf32>
    %c0_160 = arith.constant 0 : index
    %c0_161 = arith.constant 0 : index
    %299 = vector.load %arg15[%c0_160, %c0_161] : memref<32x8xf32, #tpu.memory_space<vmem>>, vector<32x8xf32>
    tpu.vector_store %arg15[%c0_160, %c0_161], %298 {strides = array<i32>} : memref<32x8xf32, #tpu.memory_space<vmem>>, vector<32x8xf32>,
    return
  }
  func.func @transform_0(%arg0: i32) -> (i32, i32) {
    %c0_i32 = arith.constant 0 : i32
    %c0_i32_0 = arith.constant 0 : i32
    return %c0_i32, %arg0 : i32, i32
  }
  func.func @transform_1(%arg0: i32) -> (i32, i32) {
    %c0_i32 = arith.constant 0 : i32
    %c0_i32_0 = arith.constant 0 : i32
    return %c0_i32, %arg0 : i32, i32
  }
  func.func @transform_2(%arg0: i32) -> (i32, i32, i32) {
    %c0_i32 = arith.constant 0 : i32
    %c0_i32_0 = arith.constant 0 : i32
    %c0_i32_1 = arith.constant 0 : i32
    %c0_i32_2 = arith.constant 0 : i32
    return %c0_i32, %c0_i32_0, %c0_i32_1 : i32, i32, i32
  }
  func.func @transform_3(%arg0: i32) -> (i32, i32, i32) {
    %c0_i32 = arith.constant 0 : i32
    %c0_i32_0 = arith.constant 0 : i32
    %c0_i32_1 = arith.constant 0 : i32
    %c0_i32_2 = arith.constant 0 : i32
    return %c0_i32, %c0_i32_0, %c0_i32_1 : i32, i32, i32
  }
  func.func @transform_4(%arg0: i32) -> (i32, i32, i32) {
    %c0_i32 = arith.constant 0 : i32
    %c0_i32_0 = arith.constant 0 : i32
    %c0_i32_1 = arith.constant 0 : i32
    %c0_i32_2 = arith.constant 0 : i32
    return %c0_i32, %c0_i32_0, %c0_i32_1 : i32, i32, i32
  }
  func.func @transform_5(%arg0: i32) -> (i32, i32, i32) {
    %c0_i32 = arith.constant 0 : i32
    %c0_i32_0 = arith.constant 0 : i32
    %c0_i32_1 = arith.constant 0 : i32
    %c0_i32_2 = arith.constant 0 : i32
    return %c0_i32, %c0_i32_0, %c0_i32_1 : i32, i32, i32
  }
  func.func @transform_6(%arg0: i32) -> (i32, i32, i32) {
    %c0_i32 = arith.constant 0 : i32
    %c0_i32_0 = arith.constant 0 : i32
    %c0_i32_1 = arith.constant 0 : i32
    %c0_i32_2 = arith.constant 0 : i32
    return %c0_i32, %c0_i32_0, %c0_i32_1 : i32, i32, i32
  }
  func.func @transform_7(%arg0: i32) -> (i32, i32, i32) {
    %c0_i32 = arith.constant 0 : i32
    %c0_i32_0 = arith.constant 0 : i32
    %c0_i32_1 = arith.constant 0 : i32
    %c0_i32_2 = arith.constant 0 : i32
    return %c0_i32, %c0_i32_0, %c0_i32_1 : i32, i32, i32
  }
  func.func @transform_8(%arg0: i32) -> (i32, i32) {
    %c0_i32 = arith.constant 0 : i32
    %c0_i32_0 = arith.constant 0 : i32
    %c0_i32_1 = arith.constant 0 : i32
    return %c0_i32, %c0_i32_0 : i32, i32
  }
  func.func @transform_9(%arg0: i32) -> (i32, i32) {
    %c0_i32 = arith.constant 0 : i32
    %c0_i32_0 = arith.constant 0 : i32
    %c0_i32_1 = arith.constant 0 : i32
    return %c0_i32, %c0_i32_0 : i32, i32
  }
  func.func @transform_10(%arg0: i32) -> (i32, i32) {
    %c0_i32 = arith.constant 0 : i32
    %c0_i32_0 = arith.constant 0 : i32
    %c0_i32_1 = arith.constant 0 : i32
    return %c0_i32, %c0_i32_0 : i32, i32
  }
  func.func @transform_11(%arg0: i32) -> (i32, i32) {
    %c0_i32 = arith.constant 0 : i32
    %c0_i32_0 = arith.constant 0 : i32
    %c0_i32_1 = arith.constant 0 : i32
    return %c0_i32, %c0_i32_0 : i32, i32
  }
  func.func @transform_12(%arg0: i32) -> (i32, i32) {
    %c0_i32 = arith.constant 0 : i32
    %c0_i32_0 = arith.constant 0 : i32
    %c0_i32_1 = arith.constant 0 : i32
    return %c0_i32, %c0_i32_0 : i32, i32
  }
  func.func @transform_13(%arg0: i32) -> (i32, i32) {
    %c0_i32 = arith.constant 0 : i32
    %c0_i32_0 = arith.constant 0 : i32
    %c0_i32_1 = arith.constant 0 : i32
    return %c0_i32, %c0_i32_0 : i32, i32
  }
  func.func @transform_14(%arg0: i32) -> (i32, i32) {
    %c0_i32 = arith.constant 0 : i32
    %c0_i32_0 = arith.constant 0 : i32
    return %c0_i32, %arg0 : i32, i32
  }
}

</mosaic_0001>

<bundles_post_ra>
// kernel: tpu_custom_call.1
= control target key start
LH: loop header
LB: loop body
LE: loop exit
PB: predicated region body
PF: predicated region fallthrough
CT: control target
= control target key end

     0   :  { %v3114_v0 = vmov 0   ;;  %vm149_vm0 = vcmask 130048   ;;  %vm325_vm1 = vcmask 523264   ;;  %vm2439_vm2 = vcmask 64512   ;;  %s4020_s3 = inlined_call_operand.vmem [shape: f32[3,64,1], index: 3, kind: input, shape index: {}]   ;;  %s4021_s0 = inlined_call_operand.vmem [shape: f32[16,8], index: 0, kind: input, shape index: {}]   ;;  %s4022_s2 = inlined_call_operand.vmem [shape: bf16[3,64,16], index: 2, kind: input, shape index: {}]   ;;  %s4023_s5 = inlined_call_operand.vmem [shape: f32[3,64,1], index: 5, kind: input, shape index: {}]   ;;  %s4024_s7 = inlined_call_operand.vmem [shape: f32[3,32,1], index: 7, kind: input, shape index: {}]   ;;  %s4025_s9 = inlined_call_operand.vmem [shape: f32[32,1], index: 9, kind: input, shape index: {}]   ;;  %s4026_s4 = inlined_call_operand.vmem [shape: bf16[3,64,64], index: 4, kind: input, shape index: {}]   ;;  %s4027_s11 = inlined_call_operand.vmem [shape: f32[32,1], index: 11, kind: input, shape index: {}]   ;;  %s4028_s13 = inlined_call_operand.vmem [shape: f32[16,1], index: 13, kind: input, shape index: {}]   ;;  %s4029_s6 = inlined_call_operand.vmem [shape: bf16[3,32,64], index: 6, kind: input, shape index: {}]   ;;  %s4030_s8 = inlined_call_operand.vmem [shape: bf16[32,16], index: 8, kind: input, shape index: {}]   ;;  %s4031_s14 = inlined_call_operand.vmem [shape: f32[32,8], index: 14, kind: output, shape index: {}]   ;;  %s4032_s10 = inlined_call_operand.vmem [shape: bf16[32,32], index: 10, kind: input, shape index: {}]   ;;  %s4033_s12 = inlined_call_operand.vmem [shape: bf16[16,32], index: 12, kind: input, shape index: {}]   ;;  %s4034_s1 = inlined_call_operand.vmem [shape: f32[8,8], index: 1, kind: input, shape index: {}]  }
   0x1   :  { %3006 = vset.pattern.permute.xlu1 %v3114_v0  ;;  %3005 = vset.pattern.permute.xlu0 %v3114_v0  ;;  %v2458_v1 = vld [vmem:[%s4020_s3 + $0x90] sm:$0xff]  ;;  %v2456_v2 = vld [vmem:[%s4020_s3 + $0x80] sm:$0xff]  ;;  %v2459_v3 = vld [vmem:[%s4020_s3 + $0x98] sm:$0xff]  ;;  %vm1602_vm3 = vcmask 261120   ;;  %vm3116_vm4 = vmmov 0  }
   0x2   :  { %101 = vperm.xlu1 %3006, %v2458_v1   ;;  %91 = vperm.xlu0 %3005, %v2456_v2   ;;  %v2457_v4 = vld [vmem:[%s4020_s3 + $0x88] sm:$0xff]  ;;  %v3207_v5 = vld [vmem:[%s4021_s0] sm:$0xff]  ;;  %v3009_v13 = vld [vmem:[%s4022_s2 + $0x50] sm:$0xff]  }
   0x3   :  { %v3212_v6 = vld [vmem:[%s4021_s0 + $0x8] sm:$0xff]  ;;  %v3215_v7 = vmul.f32 0.0, %v3207_v5  ;;  %v3007_v8 = vld [vmem:[%s4022_s2 + $0x40] sm:$0xff]   ;;  %v2463_v14 = vld [vmem:[%s4020_s3 + $0xb8] sm:$0xff] }
   0x4   :  { %2754 = vmatprep.mubr.msk.bf16.mxu0 %vm149_vm0, %v3007_v8  ;;  %v2461_v10 = vld [vmem:[%s4020_s3 + $0xa8] sm:$0xff]  ;;  %v2460_v11 = vld [vmem:[%s4020_s3 + $0xa0] sm:$0xff]  ;;  %v2462_v15 = vld [vmem:[%s4020_s3 + $0xb0] sm:$0xff] }
   0x5   :  { %v70_v9 = vpack.c.bf16 %v3212_v6, %v3215_v7  ;;  %v3008_v12 = vld [vmem:[%s4022_s2 + $0x48] sm:$0xff]   ;;  %v2480_v17 = vld [vmem:[%s4023_s5 + $0x80] sm:$0xff]  ;;  %v3010_v18 = vld [vmem:[%s4022_s2 + $0x58] sm:$0xff]  }
   0x6   :  { %106 = vperm.xlu1 %3006, %v2459_v3   ;;  %96 = vperm.xlu0 %3005, %v2457_v4   ;;  %v2481_v16 = vld [vmem:[%s4023_s5 + $0x88] sm:$0xff]  ;;  %v2483_v19 = vld [vmem:[%s4023_s5 + $0x98] sm:$0xff]  ;;  %v2482_v20 = vld [vmem:[%s4023_s5 + $0x90] sm:$0xff] }
   0x7   :  { %2752 = vmatprep.subr.bf16.mxu0 %v70_v9  ;;  %v2485_v21 = vld [vmem:[%s4023_s5 + $0xa8] sm:$0xff]  ;;  %v2484_v22 = vld [vmem:[%s4023_s5 + $0xa0] sm:$0xff]  ;;  %v2487_v23 = vld [vmem:[%s4023_s5 + $0xb8] sm:$0xff] }
   0x8   :  { %2753 = vmatpush3.bf16.msra.mxu0 %v70_v9  ;;  %v2486_v24 = vld [vmem:[%s4023_s5 + $0xb0] sm:$0xff]  ;;  %v2500_v25 = vld [vmem:[%s4024_s7 + $0x40] sm:$0xff]  ;;  %v2501_v26 = vld [vmem:[%s4024_s7 + $0x48] sm:$0xff] }
   0x9   :  { %v2502_v27 = vld [vmem:[%s4024_s7 + $0x50] sm:$0xff]  ;;  %v2503_v28 = vld [vmem:[%s4024_s7 + $0x58] sm:$0xff]  ;;  %v2517_v29 = vld [vmem:[%s4020_s3 + $0x48] sm:$0xff] }
   0xa   :  { %116 = vperm.xlu1 %3006, %v2461_v10   ;;  %111 = vperm.xlu0 %3005, %v2460_v11   ;;  %v2516_v30 = vld [vmem:[%s4020_s3 + $0x40] sm:$0xff]  ;;  %v2519_v31 = vld [vmem:[%s4020_s3 + $0x58] sm:$0xff]  ;;  %v2518_v32 = vld [vmem:[%s4020_s3 + $0x50] sm:$0xff] }
   0xb   :  { %2755 = vmatmul.mubr.msk.bf16.vlgmr.msra.gmra.mrb[0].mxu0 %vm149_vm0, %v3008_v12  ;;  %v2521_v33 = vld [vmem:[%s4020_s3 + $0x68] sm:$0xff]  ;;  %v2520_v34 = vld [vmem:[%s4020_s3 + $0x60] sm:$0xff]  ;;  %v2523_v35 = vld [vmem:[%s4020_s3 + $0x78] sm:$0xff] }
   0xc   :  { %2758 = vmatprep.mubr.msk.bf16.mxu0 %vm149_vm0, %v3009_v13  ;;  %v2522_v36 = vld [vmem:[%s4020_s3 + $0x70] sm:$0xff]  ;;  %v2541_v37 = vld [vmem:[%s4023_s5 + $0x48] sm:$0xff]  ;;  %v2540_v38 = vld [vmem:[%s4023_s5 + $0x40] sm:$0xff] }
   0xd   :  { %v2543_v39 = vld [vmem:[%s4023_s5 + $0x58] sm:$0xff]  ;;  %v2542_v40 = vld [vmem:[%s4023_s5 + $0x50] sm:$0xff]  ;;  %v2545_v41 = vld [vmem:[%s4023_s5 + $0x68] sm:$0xff] }
   0xe   :  { %126 = vperm.xlu1 %3006, %v2463_v14   ;;  %121 = vperm.xlu0 %3005, %v2462_v15   ;;  %v2544_v42 = vld [vmem:[%s4023_s5 + $0x60] sm:$0xff]  ;;  %v2547_v43 = vld [vmem:[%s4023_s5 + $0x78] sm:$0xff]  ;;  %v2546_v44 = vld [vmem:[%s4023_s5 + $0x70] sm:$0xff] }
   0xf   :  { %v2561_v45 = vld [vmem:[%s4024_s7 + $0x28] sm:$0xff]  ;;  %v2560_v46 = vld [vmem:[%s4024_s7 + $0x20] sm:$0xff]  ;;  %v2563_v47 = vld [vmem:[%s4024_s7 + $0x38] sm:$0xff] }
  0x10   :  { %v2562_v48 = vld [vmem:[%s4024_s7 + $0x30] sm:$0xff]  ;;  %v1010_v49 = vld [vmem:[%s4020_s3 + $0x8] sm:$0xff]  ;;  %v1009_v50 = vld [vmem:[%s4020_s3] sm:$0xff] }
  0x11   :  { %v1012_v51 = vld [vmem:[%s4020_s3 + $0x18] sm:$0xff]  ;;  %v1011_v52 = vld [vmem:[%s4020_s3 + $0x10] sm:$0xff]  ;;  %v1014_v53 = vld [vmem:[%s4020_s3 + $0x28] sm:$0xff] }
  0x12   :  { %272 = vperm.xlu1 %3006, %v2481_v16   ;;  %267 = vperm.xlu0 %3005, %v2480_v17   ;;  %v1013_v54 = vld [vmem:[%s4020_s3 + $0x20] sm:$0xff]  ;;  %v1016_v55 = vld [vmem:[%s4020_s3 + $0x38] sm:$0xff]  ;;  %v1015_v56 = vld [vmem:[%s4020_s3 + $0x30] sm:$0xff] }
  0x13   :  { %2759 = vmatmul.mubr.msk.bf16.gmra.mrb[4].mxu0 %vm149_vm0, %v3010_v18  ;;  %v1183_v57 = vld [vmem:[%s4023_s5 + $0x8] sm:$0xff]  ;;  %v1182_v58 = vld [vmem:[%s4023_s5] sm:$0xff]  ;;  %v1185_v59 = vld [vmem:[%s4023_s5 + $0x18] sm:$0xff] }
  0x14   :  { %v1184_v60 = vld [vmem:[%s4023_s5 + $0x10] sm:$0xff]  ;;  %v1187_v61 = vld [vmem:[%s4023_s5 + $0x28] sm:$0xff]  ;;  %v1186_v62 = vld [vmem:[%s4023_s5 + $0x20] sm:$0xff] }
  0x15   :  { %v1189_v63 = vld [vmem:[%s4023_s5 + $0x38] sm:$0xff]  ;;  %v1188_v0 = vld [vmem:[%s4023_s5 + $0x30] sm:$0xff]  ;;  %v1351_v1 = vld [vmem:[%s4024_s7] sm:$0xff] }
  0x16   :  { %282 = vperm.xlu1 %3006, %v2483_v19   ;;  %277 = vperm.xlu0 %3005, %v2482_v20   ;;  %v1352_v2 = vld [vmem:[%s4024_s7 + $0x8] sm:$0xff]  ;;  %v1353_v3 = vld [vmem:[%s4024_s7 + $0x10] sm:$0xff]  ;;  %v1354_v4 = vld [vmem:[%s4024_s7 + $0x18] sm:$0xff] }
  0x17   :  { %v1466_v8 = vld [vmem:[%s4025_s9 + $0x8] sm:$0xff]  ;;  %v1465_v9 = vld [vmem:[%s4025_s9] sm:$0xff]  ;;  %v1468_v11 = vld [vmem:[%s4025_s9 + $0x18] sm:$0xff] }
  0x18   :  { %v3011_v10 = vld [vmem:[%s4026_s4 + $0x40] sm:$0xff]   ;;  %v1467_v12 = vld [vmem:[%s4025_s9 + $0x10] sm:$0xff]  ;;  %v1569_v13 = vld [vmem:[%s4027_s11 + $0x8] sm:$0xff] }
  0x19   :  { %2770 = vmatprep.mubr.msk.bf16.mxu1 %vm325_vm1, %v3011_v10  ;;  %v1568_v14 = vld [vmem:[%s4027_s11] sm:$0xff]  ;;  %v1571_v15 = vld [vmem:[%s4027_s11 + $0x18] sm:$0xff]  ;;  %v1570_v16 = vld [vmem:[%s4027_s11 + $0x10] sm:$0xff] }
  0x1a   :  { %292 = vperm.xlu1 %3006, %v2485_v21   ;;  %287 = vperm.xlu0 %3005, %v2484_v22   ;;  %v1670_v17 = vld [vmem:[%s4028_s13] sm:$0xff] }
  0x1e   :  { %302 = vperm.xlu1 %3006, %v2487_v23   ;;  %297 = vperm.xlu0 %3005, %v2486_v24  }
  0x22   :  { %435 = vperm.xlu1 %3006, %v2500_v25   ;;  %440 = vperm.xlu0 %3005, %v2501_v26  }
  0x26   :  { %445 = vperm.xlu1 %3006, %v2502_v27   ;;  %450 = vperm.xlu0 %3005, %v2503_v28  }
  0x2a   :  { %562 = vperm.xlu1 %3006, %v2517_v29   ;;  %557 = vperm.xlu0 %3005, %v2516_v30  }
  0x2e   :  { %572 = vperm.xlu1 %3006, %v2519_v31   ;;  %567 = vperm.xlu0 %3005, %v2518_v32  }
  0x32   :  { %582 = vperm.xlu1 %3006, %v2521_v33   ;;  %577 = vperm.xlu0 %3005, %v2520_v34  }
  0x36   :  { %592 = vperm.xlu1 %3006, %v2523_v35   ;;  %587 = vperm.xlu0 %3005, %v2522_v36  }
  0x3a   :  { %737 = vperm.xlu1 %3006, %v2541_v37   ;;  %732 = vperm.xlu0 %3005, %v2540_v38  }
  0x3e   :  { %747 = vperm.xlu1 %3006, %v2543_v39   ;;  %742 = vperm.xlu0 %3005, %v2542_v40  }
  0x42   :  { %757 = vperm.xlu1 %3006, %v2545_v41   ;;  %752 = vperm.xlu0 %3005, %v2544_v42  }
  0x46   :  { %767 = vperm.xlu1 %3006, %v2547_v43   ;;  %762 = vperm.xlu0 %3005, %v2546_v44  }
  0x4a   :  { %904 = vperm.xlu1 %3006, %v2561_v45   ;;  %899 = vperm.xlu0 %3005, %v2560_v46  }
  0x4e   :  { %914 = vperm.xlu1 %3006, %v2563_v47   ;;  %909 = vperm.xlu0 %3005, %v2562_v48  }
  0x52   :  { %1024 = vperm.xlu1 %3006, %v1010_v49   ;;  %1019 = vperm.xlu0 %3005, %v1009_v50  }
  0x56   :  { %1034 = vperm.xlu1 %3006, %v1012_v51   ;;  %1029 = vperm.xlu0 %3005, %v1011_v52  }
  0x5a   :  { %1044 = vperm.xlu1 %3006, %v1014_v53   ;;  %1039 = vperm.xlu0 %3005, %v1013_v54  }
  0x5e   :  { %1054 = vperm.xlu1 %3006, %v1016_v55   ;;  %1049 = vperm.xlu0 %3005, %v1015_v56  }
  0x62   :  { %1197 = vperm.xlu1 %3006, %v1183_v57   ;;  %1192 = vperm.xlu0 %3005, %v1182_v58  }
  0x66   :  { %1207 = vperm.xlu1 %3006, %v1185_v59   ;;  %1202 = vperm.xlu0 %3005, %v1184_v60  }
  0x6a   :  { %1217 = vperm.xlu1 %3006, %v1187_v61   ;;  %1212 = vperm.xlu0 %3005, %v1186_v62   ;;  %v3012_v62 = vld [vmem:[%s4026_s4 + $0x48] sm:$0xff]  }
  0x6e   :  { %1227 = vperm.xlu1 %3006, %v1189_v63   ;;  %1222 = vperm.xlu0 %3005, %v1188_v0   ;;  %v3013_v63 = vld [vmem:[%s4026_s4 + $0x50] sm:$0xff]   ;;  %v3014_v0 = vld [vmem:[%s4026_s4 + $0x58] sm:$0xff]  }
  0x72   :  { %1357 = vperm.xlu1 %3006, %v1351_v1   ;;  %1362 = vperm.xlu0 %3005, %v1352_v2   ;;  %v3015_v1 = vld [vmem:[%s4029_s6 + $0x20] sm:$0xff]  }
  0x73   :  { %2786 = vmatprep.mubr.msk.bf16.mxu0 %vm325_vm1, %v3015_v1 }
  0x76   :  { %1367 = vperm.xlu1 %3006, %v1353_v3   ;;  %1372 = vperm.xlu0 %3005, %v1354_v4  }
  0x7a   :  { %1476 = vperm.xlu1 %3006, %v1466_v8   ;;  %1471 = vperm.xlu0 %3005, %v1465_v9  }
  0x7e   :  { %1486 = vperm.xlu1 %3006, %v1468_v11   ;;  %1481 = vperm.xlu0 %3005, %v1467_v12  }
  0x81   :  { %v3434_v18 = vpop.permute.xlu0 %91  ;;  %v3436_v19 = vpop.permute.xlu1 %101 }
  0x82   :  { %1579 = vperm.xlu1 %3006, %v1569_v13   ;;  %1574 = vperm.xlu0 %3005, %v1568_v14   ;;  %4066 = vst [vmem:[#allocation2_spill] sm:$0xff] %v3434_v18  ;;  %4067 = vst [vmem:[#allocation3_spill] sm:$0xff] %v3436_v19 }
  0x85   :  { %v3438_v20 = vpop.permute.xlu0 %96  ;;  %v3440_v21 = vpop.permute.xlu1 %106 }
  0x86   :  { %1589 = vperm.xlu1 %3006, %v1571_v15   ;;  %1584 = vperm.xlu0 %3005, %v1570_v16   ;;  %4068 = vst [vmem:[#allocation4_spill] sm:$0xff] %v3438_v20  ;;  %4069 = vst [vmem:[#allocation5_spill] sm:$0xff] %v3440_v21 }
  0x89   :  { %v3443_v25 = vpop.permute.xlu0 %111  ;;  %v3447_v31 = vpop.permute.xlu1 %116 }
  0x8a   :  { %1674 = vperm.xlu0 %3005, %v1670_v17   ;;  %4070 = vst [vmem:[#allocation6_spill] sm:$0xff] %v3443_v25  ;;  %4071 = vst [vmem:[#allocation7_spill] sm:$0xff] %v3447_v31 }
  0x8d   :  { %v3450_v38 = vpop.permute.xlu0 %121  ;;  %v3453_v45 = vpop.permute.xlu1 %126 }
  0x8e   :  { %4072 = vst [vmem:[#allocation8_spill] sm:$0xff] %v3450_v38  ;;  %4073 = vst [vmem:[#allocation9_spill] sm:$0xff] %v3453_v45 }
  0x91   :  { %v3474_v2 = vpop.permute.xlu0 %267  ;;  %v3476_v3 = vpop.permute.xlu1 %272 }
  0x92   :  { %4074 = vst [vmem:[#allocation10_spill] sm:$0xff] %v3474_v2  ;;  %4075 = vst [vmem:[#allocation11_spill] sm:$0xff] %v3476_v3 }
  0x95   :  { %v3478_v4 = vpop.permute.xlu0 %277  ;;  %v3480_v8 = vpop.permute.xlu1 %282 }
  0x96   :  { %4076 = vst [vmem:[#allocation12_spill] sm:$0xff] %v3478_v4  ;;  %4077 = vst [vmem:[#allocation13_spill] sm:$0xff] %v3480_v8 }
  0x99   :  { %v3483_v12 = vpop.permute.xlu0 %287 }
  0x9a   :  { %4078 = vst [vmem:[#allocation14_spill] sm:$0xff] %v3483_v12 }
  0xde   :  { %v2756_v22 = vpop.f32.mrb[0].mxu0 }
  0xdf   :  { %v205_v23 = vadd.f32 %v2756_v22, %v3436_v19  ;;  %v196_v24 = vpop.f32.mrb[1].mxu0  ;;  %v3487_v22 = vpop.permute.xlu1 %292 }
  0xe0   :  { %v197_v26 = vadd.f32 %v196_v24, %v3434_v18  ;;  %v2757_v27 = vpop.f32.mrb[2].mxu0  ;;  %4079 = vst [vmem:[#allocation15_spill] sm:$0xff] %v3487_v22 }
  0xe1   :  { %v229_v28 = vmul.f32 0.01, %v205_v23  ;;  %v208_v29 = vadd.f32 %v2757_v27, %v3440_v21  ;;  %v199_v30 = vpop.f32.mrb[3].mxu0 }
  0xe2   :  { %v227_v32 = vmul.f32 0.01, %v197_v26  ;;  %v200_v33 = vadd.f32 %v199_v30, %v3438_v20  ;;  %v3490_v30 = vpop.permute.xlu0 %297 }
  0xe3   :  { %v230_v34 = vmul.f32 0.01, %v208_v29  ;;  %v237_v36 = vmax.f32 %v205_v23, %v229_v28  ;;  %4080 = vst [vmem:[#allocation16_spill] sm:$0xff] %v3490_v30 }
  0xe4   :  { %v228_v35 = vmul.f32 0.01, %v200_v33  ;;  %v235_v39 = vmax.f32 %v197_v26, %v227_v32 }
  0xe5   :  { %v238_v37 = vmax.f32 %v208_v29, %v230_v34 }
  0xe6   :  { %v236_v40 = vmax.f32 %v200_v33, %v228_v35  ;;  %v2760_v41 = vpop.f32.mrb[4].mxu0 }
  0xe7   :  { %v221_v42 = vadd.f32 %v2760_v41, %v3450_v38  ;;  %v212_v43 = vpop.f32.mrb[5].mxu0  ;;  %v253_v44 = vpack.c.bf16 %v238_v37, %v237_v36 }
  0xe8   :  { %v213_v46 = vadd.f32 %v212_v43, %v3443_v25  ;;  %v2761_v47 = vpop.f32.mrb[6].mxu0  ;;  %v252_v48 = vpack.c.bf16 %v236_v40, %v235_v39  ;;  %v3493_v39 = vpop.permute.xlu1 %302 }
  0xe9   :  { %v233_v49 = vmul.f32 0.01, %v221_v42  ;;  %v224_v50 = vadd.f32 %v2761_v47, %v3453_v45  ;;  %v215_v51 = vpop.f32.mrb[7].mxu0  ;;  %4081 = vst [vmem:[#allocation17_spill] sm:$0xff] %v3493_v39 }
  0xea   :  { %v231_v52 = vmul.f32 0.01, %v213_v46  ;;  %v216_v53 = vadd.f32 %v215_v51, %v3447_v31  ;;  %2762 = vmatprep.subr.bf16.mxu1 %v252_v48 }
  0xeb   :  { %v234_v54 = vmul.f32 0.01, %v224_v50  ;;  %2763 = vmatpush3.bf16.msra.mxu1 %v252_v48  ;;  %v241_v56 = vmax.f32 %v221_v42, %v233_v49 }
  0xec   :  { %v232_v55 = vmul.f32 0.01, %v216_v53  ;;  %2764 = vmatprep.subr.bf16.mxu1 %v253_v44  ;;  %v239_v58 = vmax.f32 %v213_v46, %v231_v52 }
  0xed   :  { %v242_v57 = vmax.f32 %v224_v50, %v234_v54 }
  0xee   :  { %v240_v59 = vmax.f32 %v216_v53, %v232_v55 }
  0xef   :  { %2765 = vmatpush3.bf16.msra.mxu1 %v253_v44  ;;  %v255_v60 = vpack.c.bf16 %v242_v57, %v241_v56  ;;  %v3016_v57 = vld [vmem:[%s4029_s6 + $0x28] sm:$0xff]  }
  0xf0   :  { %v254_v61 = vpack.c.bf16 %v240_v59, %v239_v58  ;;  %v3017_v58 = vld [vmem:[%s4022_s2 + $0x20] sm:$0xff]  }
  0xf2   :  { %2766 = vmatprep.subr.bf16.mxu1 %v254_v61 }
  0xf3   :  { %2767 = vmatpush3.bf16.msra.mxu1 %v254_v61 }
  0xf4   :  { %2768 = vmatprep.subr.bf16.mxu1 %v255_v60 }
  0xf7   :  { %2769 = vmatpush3.bf16.msra.mxu1 %v255_v60  ;;  %v3506_v60 = vpop.permute.xlu1 %435 }
  0xf8   :  { %4082 = vst [vmem:[#allocation18_spill] sm:$0xff] %v3506_v60 }
  0xfa   :  { %2771 = vmatmul.mubr.msk.bf16.vlgmr.msra.gmra.mrb[0].mxu1 %vm325_vm1, %v3012_v62 }
  0xfb   :  { %2774 = vmatprep.mubr.msk.bf16.mxu1 %vm325_vm1, %v3013_v63 }
 0x102   :  { %2775 = vmatmul.mubr.msk.bf16.gmra.mrb[4].mxu1 %vm325_vm1, %v3014_v0  ;;  %v3509_v0 = vpop.permute.xlu0 %440 }
 0x103   :  { %4083 = vst [vmem:[#allocation19_spill] sm:$0xff] %v3509_v0 }
 0x1cd   :  { %v2772_v9 = vpop.f32.mrb[0].mxu1 }
 0x1ce   :  { %v381_v10 = vadd.f32 %v2772_v9, %v3478_v4  ;;  %v372_v11 = vpop.f32.mrb[1].mxu1 }
 0x1cf   :  { %v373_v13 = vadd.f32 %v372_v11, %v3474_v2  ;;  %v2773_v14 = vpop.f32.mrb[2].mxu1 }
 0x1d0   :  { %v405_v15 = vmul.f32 0.01, %v381_v10  ;;  %v384_v16 = vadd.f32 %v2773_v14, %v3480_v8  ;;  %v375_v17 = vpop.f32.mrb[3].mxu1 }
 0x1d1   :  { %v403_v23 = vmul.f32 0.01, %v373_v13  ;;  %v376_v24 = vadd.f32 %v375_v17, %v3476_v3  ;;  %v3512_v17 = vpop.permute.xlu0 %450 }
 0x1d2   :  { %v406_v26 = vmul.f32 0.01, %v384_v16  ;;  %v413_v28 = vmax.f32 %v381_v10, %v405_v15  ;;  %4084 = vst [vmem:[#allocation20_spill] sm:$0xff] %v3512_v17 }
 0x1d3   :  { %v404_v27 = vmul.f32 0.01, %v376_v24  ;;  %v411_v32 = vmax.f32 %v373_v13, %v403_v23 }
 0x1d4   :  { %v414_v29 = vmax.f32 %v384_v16, %v406_v26 }
 0x1d5   :  { %v412_v33 = vmax.f32 %v376_v24, %v404_v27  ;;  %v2776_v34 = vpop.f32.mrb[4].mxu1  ;;  %v3515_v24 = vpop.permute.xlu1 %445 }
 0x1d6   :  { %v397_v35 = vadd.f32 %v2776_v34, %v3490_v30  ;;  %v388_v36 = vpop.f32.mrb[5].mxu1  ;;  %v425_v37 = vpack.c.bf16 %v414_v29, %v413_v28  ;;  %4085 = vst [vmem:[#allocation21_spill] sm:$0xff] %v3515_v24 }
 0x1d7   :  { %v389_v40 = vadd.f32 %v388_v36, %v3483_v12  ;;  %v2777_v41 = vpop.f32.mrb[6].mxu1  ;;  %v424_v42 = vpack.c.bf16 %v412_v33, %v411_v32 }
 0x1d8   :  { %v409_v43 = vmul.f32 0.01, %v397_v35  ;;  %v400_v44 = vadd.f32 %v2777_v41, %v3493_v39  ;;  %v391_v46 = vpop.f32.mrb[7].mxu1 }
 0x1d9   :  { %v407_v47 = vmul.f32 0.01, %v389_v40  ;;  %v392_v48 = vadd.f32 %v391_v46, %v3487_v22  ;;  %2778 = vmatprep.subr.bf16.mxu0 %v424_v42 }
 0x1da   :  { %v410_v49 = vmul.f32 0.01, %v400_v44  ;;  %2779 = vmatpush3.bf16.msra.mxu0 %v424_v42  ;;  %v417_v51 = vmax.f32 %v397_v35, %v409_v43  ;;  %v3546_v42 = vld [vmem:[%s4026_s4 + $0x20] sm:$0xff]   ;;  %v3550_v43 = vpop.permute.xlu0 %557 }
 0x1db   :  { %v408_v50 = vmul.f32 0.01, %v392_v48  ;;  %2780 = vmatprep.subr.bf16.mxu0 %v425_v37  ;;  %v415_v53 = vmax.f32 %v389_v40, %v407_v47  ;;  %2808 = vmatprep.mubr.msk.bf16.mxu1 %vm325_vm1, %v3546_v42 }
 0x1dc   :  { %v418_v52 = vmax.f32 %v400_v44, %v410_v49  ;;  %v3552_v44 = vpop.permute.xlu1 %562 }
 0x1dd   :  { %v416_v54 = vmax.f32 %v392_v48, %v408_v50 }
 0x1de   :  { %2781 = vmatpush3.bf16.msra.mxu0 %v425_v37  ;;  %v427_v55 = vpack.c.bf16 %v418_v52, %v417_v51  ;;  %v3554_v46 = vpop.permute.xlu0 %567 }
 0x1df   :  { %v426_v56 = vpack.c.bf16 %v416_v54, %v415_v53 }
 0x1e0   :  { %v3556_v47 = vpop.permute.xlu1 %572 }
 0x1e1   :  { %2782 = vmatprep.subr.bf16.mxu0 %v426_v56 }
 0x1e2   :  { %2783 = vmatpush3.bf16.msra.mxu0 %v426_v56  ;;  %v3559_v51 = vpop.permute.xlu0 %577 }
 0x1e3   :  { %2784 = vmatprep.subr.bf16.mxu0 %v427_v55 }
 0x1e6   :  { %2785 = vmatpush3.bf16.msra.mxu0 %v427_v55 }
 0x1e9   :  { %2787 = vmatmul.mubr.msk.bf16.vlgmr.msra.gmra.mrb[8].mxu0 %vm325_vm1, %v3016_v57  ;;  %v3563_v57 = vpop.permute.xlu1 %582 }
 0x1ea   :  { %2792 = vmatprep.mubr.msk.bf16.mxu0 %vm149_vm0, %v3017_v58 }
 0x2bc   :  { %v2788_v59 = vpop.f32.mrb[8].mxu0 }
 0x2bd   :  { %v503_v61 = vpop.f32.mrb[9].mxu0  ;;  %v512_v26 = vadd.f32 %v2788_v59, %v3515_v24 }
 0x2be   :  { %v504_v62 = vadd.f32 %v503_v61, %v3506_v60  ;;  %v2789_v63 = vpop.f32.mrb[10].mxu0 }
 0x2bf   :  { %v506_v1 = vpop.f32.mrb[11].mxu0  ;;  %v515_v23 = vadd.f32 %v2789_v63, %v3512_v17  ;;  %v520_v28 = vsub.f32 %v3207_v5, %v512_v26  ;;  %v3018_v5 = vld [vmem:[%s4022_s2 + $0x28] sm:$0xff]  }
 0x2c0   :  { %3042 = vtanh.f32 %v504_v62  ;;  %v507_v9 = vadd.f32 %v506_v1, %v3509_v0 }
 0x2c1   :  { %v521_v27 = vsub.f32 %v3212_v6, %v515_v23  ;;  %v3569_v23 = vpop.permute.xlu1 %592 }
 0x2c2   :  { %3044 = vtanh.f32 %v507_v9  ;;  %v3566_v9 = vpop.permute.xlu0 %587 }
 0x2c3   :  { %v523_v32 = vmul.f32 0.0, %v521_v27 }
 0x2ca   :  { %v3043_v10 = vpop.eup %3042 }
 0x2cb   :  { %v524_v11 = vsub.f32 0.0, %v3043_v10 }
 0x2cc   :  { %v3045_v13 = vpop.eup %3044 }
 0x2cd   :  { %v526_v14 = vmul.f32 1.442695, %v524_v11  ;;  %v525_v15 = vsub.f32 0.0, %v3045_v13 }
 0x2cf   :  { %3046 = vpow2.f32 %v526_v14  ;;  %v528_v16 = vmul.f32 1.442695, %v525_v15 }
 0x2d1   :  { %3048 = vpow2.f32 %v528_v16 }
 0x2d9   :  { %v3047_v29 = vpop.eup %3046 }
 0x2da   :  { %v530_v33 = vmul.f32 %v3047_v29, %v520_v28 }
 0x2db   :  { %v3049_v34 = vpop.eup %3048 }
 0x2dc   :  { %v531_v35 = vmul.f32 %v3049_v34, %v523_v32  ;;  %v3524_v37 = vadd.f32 %v530_v33, %v3215_v7  ;;  %v3020_v7 = vld [vmem:[%s4022_s2 + $0x38] sm:$0xff]  }
 0x2de   :  { %v3521_v36 = vadd.f32 %v531_v35, %v3212_v6  ;;  %v3019_v6 = vld [vmem:[%s4022_s2 + $0x30] sm:$0xff]  }
 0x2e0   :  { %v3527_v40 = vmul.f32 0.0, %v3521_v36 }
 0x2e2   :  { %v536_v41 = vpack.c.bf16 %v3527_v40, %v3524_v37 }
 0x2e4   :  { %2790 = vmatprep.subr.bf16.mxu0 %v536_v41 }
 0x2e5   :  { %2791 = vmatpush3.bf16.msra.mxu0 %v536_v41 }
 0x2e8   :  { %2793 = vmatmul.mubr.msk.bf16.vlgmr.msra.gmra.mrb[12].mxu0 %vm149_vm0, %v3018_v5 }
 0x2e9   :  { %2796 = vmatprep.mubr.msk.bf16.mxu0 %vm149_vm0, %v3019_v6 }
 0x2f0   :  { %2797 = vmatmul.mubr.msk.bf16.gmra.mrb[16].mxu0 %vm149_vm0, %v3020_v7 }
 0x3bb   :  { %v2794_v48 = vpop.f32.mrb[12].mxu0 }
 0x3bc   :  { %v670_v49 = vadd.f32 %v2794_v48, %v3554_v46  ;;  %v661_v50 = vpop.f32.mrb[13].mxu0 }
 0x3bd   :  { %v662_v52 = vadd.f32 %v661_v50, %v3550_v43  ;;  %v2795_v53 = vpop.f32.mrb[14].mxu0 }
 0x3be   :  { %v694_v54 = vmul.f32 0.01, %v670_v49  ;;  %v673_v55 = vadd.f32 %v2795_v53, %v3556_v47  ;;  %v664_v56 = vpop.f32.mrb[15].mxu0  ;;  %v3022_v53 = vld [vmem:[%s4026_s4 + $0x28] sm:$0xff]  }
 0x3bf   :  { %v692_v58 = vmul.f32 0.01, %v662_v52  ;;  %v665_v59 = vadd.f32 %v664_v56, %v3552_v44  ;;  %v3589_v56 = vld [vmem:[%s4029_s6 + $0x10] sm:$0xff]  }
 0x3c0   :  { %v695_v61 = vmul.f32 0.01, %v673_v55  ;;  %v702_v63 = vmax.f32 %v670_v49, %v694_v54  ;;  %v3023_v54 = vld [vmem:[%s4026_s4 + $0x30] sm:$0xff]   ;;  %2824 = vmatprep.mubr.msk.bf16.mxu0 %vm325_vm1, %v3589_v56 }
 0x3c1   :  { %v693_v62 = vmul.f32 0.01, %v665_v59  ;;  %v700_v10 = vmax.f32 %v662_v52, %v692_v58  ;;  %v3593_v58 = vpop.permute.xlu0 %732 }
 0x3c2   :  { %v703_v1 = vmax.f32 %v673_v55, %v695_v61  ;;  %v3024_v55 = vld [vmem:[%s4026_s4 + $0x38] sm:$0xff]   ;;  %4086 = vst [vmem:[#allocation22_spill] sm:$0xff] %v3593_v58 }
 0x3c3   :  { %v701_v11 = vmax.f32 %v665_v59, %v693_v62  ;;  %v2798_v13 = vpop.f32.mrb[16].mxu0  ;;  %v3595_v59 = vpop.permute.xlu1 %737 }
 0x3c4   :  { %v686_v14 = vadd.f32 %v2798_v13, %v3566_v9  ;;  %v677_v15 = vpop.f32.mrb[17].mxu0  ;;  %v718_v16 = vpack.c.bf16 %v703_v1, %v702_v63  ;;  %4087 = vst [vmem:[#allocation23_spill] sm:$0xff] %v3595_v59 }
 0x3c5   :  { %v678_v26 = vadd.f32 %v677_v15, %v3559_v51  ;;  %v2799_v27 = vpop.f32.mrb[18].mxu0  ;;  %v717_v28 = vpack.c.bf16 %v701_v11, %v700_v10  ;;  %v3597_v61 = vpop.permute.xlu0 %742 }
 0x3c6   :  { %v698_v29 = vmul.f32 0.01, %v686_v14  ;;  %v689_v32 = vadd.f32 %v2799_v27, %v3569_v23  ;;  %v680_v33 = vpop.f32.mrb[19].mxu0 }
 0x3c7   :  { %v696_v34 = vmul.f32 0.01, %v678_v26  ;;  %v681_v35 = vadd.f32 %v680_v33, %v3563_v57  ;;  %2800 = vmatprep.subr.bf16.mxu1 %v717_v28  ;;  %v3599_v62 = vpop.permute.xlu1 %747 }
 0x3c8   :  { %v699_v41 = vmul.f32 0.01, %v689_v32  ;;  %2801 = vmatpush3.bf16.msra.mxu1 %v717_v28  ;;  %v706_v6 = vmax.f32 %v686_v14, %v698_v29  ;;  %4088 = vst [vmem:[#allocation24_spill] sm:$0xff] %v3599_v62 }
 0x3c9   :  { %v697_v5 = vmul.f32 0.01, %v681_v35  ;;  %2802 = vmatprep.subr.bf16.mxu1 %v718_v16  ;;  %v704_v48 = vmax.f32 %v678_v26, %v696_v34  ;;  %v3602_v11 = vpop.permute.xlu0 %752 }
 0x3ca   :  { %v707_v7 = vmax.f32 %v689_v32, %v699_v41  ;;  %4089 = vst [vmem:[#allocation25_spill] sm:$0xff] %v3602_v11 }
 0x3cb   :  { %v705_v49 = vmax.f32 %v681_v35, %v697_v5  ;;  %v3606_v27 = vpop.permute.xlu1 %757 }
 0x3cc   :  { %2803 = vmatpush3.bf16.msra.mxu1 %v718_v16  ;;  %v720_v50 = vpack.c.bf16 %v707_v7, %v706_v6  ;;  %4090 = vst [vmem:[#allocation26_spill] sm:$0xff] %v3606_v27 }
 0x3cd   :  { %v719_v52 = vpack.c.bf16 %v705_v49, %v704_v48  ;;  %v3609_v41 = vpop.permute.xlu0 %762 }
 0x3ce   :  { %4091 = vst [vmem:[#allocation27_spill] sm:$0xff] %v3609_v41 }
 0x3cf   :  { %2804 = vmatprep.subr.bf16.mxu1 %v719_v52 }
 0x3d0   :  { %2805 = vmatpush3.bf16.msra.mxu1 %v719_v52  ;;  %v3612_v52 = vpop.permute.xlu1 %767 }
 0x3d1   :  { %2806 = vmatprep.subr.bf16.mxu1 %v720_v50  ;;  %4092 = vst [vmem:[#allocation28_spill] sm:$0xff] %v3612_v52 }
 0x3d4   :  { %2807 = vmatpush3.bf16.msra.mxu1 %v720_v50 }
 0x3d7   :  { %2809 = vmatmul.mubr.msk.bf16.vlgmr.msra.gmra.mrb[8].mxu1 %vm325_vm1, %v3022_v53 }
 0x3d8   :  { %2812 = vmatprep.mubr.msk.bf16.mxu1 %vm325_vm1, %v3023_v54 }
 0x3df   :  { %2813 = vmatmul.mubr.msk.bf16.gmra.mrb[12].mxu1 %vm325_vm1, %v3024_v55 }
 0x4aa   :  { %v2810_v63 = vpop.f32.mrb[8].mxu1 }
 0x4ab   :  { %v845_v1 = vadd.f32 %v2810_v63, %v3597_v61  ;;  %v836_v10 = vpop.f32.mrb[9].mxu1 }
 0x4ac   :  { %v837_v13 = vadd.f32 %v836_v10, %v3593_v58  ;;  %v2811_v14 = vpop.f32.mrb[10].mxu1 }
 0x4ad   :  { %v869_v15 = vmul.f32 0.01, %v845_v1  ;;  %v848_v16 = vadd.f32 %v2811_v14, %v3599_v62  ;;  %v839_v26 = vpop.f32.mrb[11].mxu1 }
 0x4ae   :  { %v867_v28 = vmul.f32 0.01, %v837_v13  ;;  %v840_v29 = vadd.f32 %v839_v26, %v3595_v59 }
 0x4af   :  { %v870_v32 = vmul.f32 0.01, %v848_v16  ;;  %v877_v34 = vmax.f32 %v845_v1, %v869_v15 }
 0x4b0   :  { %v868_v33 = vmul.f32 0.01, %v840_v29  ;;  %v875_v5 = vmax.f32 %v837_v13, %v867_v28 }
 0x4b1   :  { %v878_v35 = vmax.f32 %v848_v16, %v870_v32 }
 0x4b2   :  { %v876_v6 = vmax.f32 %v840_v29, %v868_v33  ;;  %v2814_v7 = vpop.f32.mrb[12].mxu1 }
 0x4b3   :  { %v861_v48 = vadd.f32 %v2814_v7, %v3609_v41  ;;  %v852_v49 = vpop.f32.mrb[13].mxu1  ;;  %v889_v50 = vpack.c.bf16 %v878_v35, %v877_v34  ;;  %v3026_v35 = vld [vmem:[%s4029_s6 + $0x18] sm:$0xff]   ;;  %v3628_v7 = vpop.permute.xlu0 %899 }
 0x4b4   :  { %v853_v53 = vadd.f32 %v852_v49, %v3602_v11  ;;  %v2815_v54 = vpop.f32.mrb[14].mxu1  ;;  %v888_v55 = vpack.c.bf16 %v876_v6, %v875_v5  ;;  %v3624_v5 = vld [vmem:[%s4022_s2] sm:$0xff]   ;;  %4093 = vst [vmem:[#allocation29_spill] sm:$0xff] %v3628_v7 }
 0x4b5   :  { %v873_v63 = vmul.f32 0.01, %v861_v48  ;;  %v864_v10 = vadd.f32 %v2815_v54, %v3612_v52  ;;  %v855_v1 = vpop.f32.mrb[15].mxu1  ;;  %2830 = vmatprep.mubr.msk.bf16.mxu1 %vm149_vm0, %v3624_v5 }
 0x4b6   :  { %v871_v14 = vmul.f32 0.01, %v853_v53  ;;  %v856_v15 = vadd.f32 %v855_v1, %v3606_v27  ;;  %2816 = vmatprep.subr.bf16.mxu0 %v888_v55 }
 0x4b7   :  { %v874_v13 = vmul.f32 0.01, %v864_v10  ;;  %2817 = vmatpush3.bf16.msra.mxu0 %v888_v55  ;;  %v881_v26 = vmax.f32 %v861_v48, %v873_v63 }
 0x4b8   :  { %v872_v16 = vmul.f32 0.01, %v856_v15  ;;  %2818 = vmatprep.subr.bf16.mxu0 %v889_v50  ;;  %v879_v29 = vmax.f32 %v853_v53, %v871_v14  ;;  %v3631_v53 = vpop.permute.xlu1 %904 }
 0x4b9   :  { %v882_v28 = vmax.f32 %v864_v10, %v874_v13  ;;  %4094 = vst [vmem:[#allocation30_spill] sm:$0xff] %v3631_v53  ;;  %v3634_v13 = vpop.permute.xlu0 %909 }
 0x4ba   :  { %v880_v32 = vmax.f32 %v856_v15, %v872_v16  ;;  %4095 = vst [vmem:[#allocation31_spill] sm:$0xff] %v3634_v13 }
 0x4bb   :  { %2819 = vmatpush3.bf16.msra.mxu0 %v889_v50  ;;  %v891_v33 = vpack.c.bf16 %v882_v28, %v881_v26 }
 0x4bc   :  { %v890_v34 = vpack.c.bf16 %v880_v32, %v879_v29  ;;  %v3638_v29 = vpop.permute.xlu1 %914 }
 0x4bd   :  { %4096 = vst [vmem:[#allocation32_spill] sm:$0xff] %v3638_v29 }
 0x4be   :  { %2820 = vmatprep.subr.bf16.mxu0 %v890_v34 }
 0x4bf   :  { %2821 = vmatpush3.bf16.msra.mxu0 %v890_v34 }
 0x4c0   :  { %2822 = vmatprep.subr.bf16.mxu0 %v891_v33 }
 0x4c3   :  { %2823 = vmatpush3.bf16.msra.mxu0 %v891_v33 }
 0x4c6   :  { %2825 = vmatmul.mubr.msk.bf16.vlgmr.msra.gmra.mrb[20].mxu0 %vm325_vm1, %v3026_v35 }
 0x599   :  { %v2826_v6 = vpop.f32.mrb[20].mxu0 }
 0x59a   :  { %v967_v48 = vpop.f32.mrb[21].mxu0  ;;  %v976_v26 = vadd.f32 %v2826_v6, %v3634_v13 }
 0x59b   :  { %v968_v49 = vadd.f32 %v967_v48, %v3628_v7  ;;  %v2827_v50 = vpop.f32.mrb[22].mxu0 }
 0x59c   :  { %v970_v54 = vpop.f32.mrb[23].mxu0  ;;  %v984_v28 = vsub.f32 %v3524_v37, %v976_v26  ;;  %v979_v32 = vadd.f32 %v2827_v50, %v3638_v29  ;;  %v3677_v50 = vld [vmem:[%s4026_s4] sm:$0xff]  }
 0x59d   :  { %3050 = vtanh.f32 %v968_v49  ;;  %v971_v55 = vadd.f32 %v970_v54, %v3631_v53  ;;  %2846 = vmatprep.mubr.msk.bf16.mxu0 %vm325_vm1, %v3677_v50 }
 0x59e   :  { %v986_v33 = vmul.f32 0.0, %v984_v28  ;;  %v985_v35 = vsub.f32 %v3521_v36, %v979_v32  ;;  %v3656_v36 = vld [vmem:[%s4022_s2 + $0x8] sm:$0xff]  }
 0x59f   :  { %3052 = vtanh.f32 %v971_v55 }
 0x5a7   :  { %v3051_v63 = vpop.eup %3050 }
 0x5a8   :  { %v988_v10 = vsub.f32 0.0, %v3051_v63 }
 0x5a9   :  { %v3053_v1 = vpop.eup %3052 }
 0x5aa   :  { %v990_v14 = vmul.f32 1.442695, %v988_v10  ;;  %v989_v15 = vsub.f32 0.0, %v3053_v1  ;;  %v3681_v1 = vpop.permute.xlu0 %1019 }
 0x5ac   :  { %3054 = vpow2.f32 %v990_v14  ;;  %v992_v16 = vmul.f32 1.442695, %v989_v15  ;;  %v3683_v14 = vpop.permute.xlu1 %1024 }
 0x5ae   :  { %3056 = vpow2.f32 %v992_v16  ;;  %v3685_v15 = vpop.permute.xlu0 %1029 }
 0x5b0   :  { %v3687_v16 = vpop.permute.xlu1 %1034 }
 0x5b6   :  { %v3055_v34 = vpop.eup %3054 }
 0x5b7   :  { %v994_v48 = vmul.f32 %v3055_v34, %v986_v33  ;;  %v3690_v33 = vpop.permute.xlu0 %1039 }
 0x5b8   :  { %v3057_v49 = vpop.eup %3056 }
 0x5b9   :  { %v995_v54 = vmul.f32 %v3057_v49, %v985_v35  ;;  %v3643_v55 = vadd.f32 %v994_v48, %v3524_v37  ;;  %v3661_v37 = vld [vmem:[%s4022_s2 + $0x10] sm:$0xff]  }
 0x5bb   :  { %v3646_v63 = vadd.f32 %v995_v54, %v3527_v40  ;;  %v3649_v6 = vmul.f32 0.0, %v3643_v55  ;;  %v3670_v40 = vld [vmem:[%s4022_s2 + $0x18] sm:$0xff]  }
 0x5bd   :  { %v1000_v10 = vpack.c.bf16 %v3646_v63, %v3649_v6 }
 0x5bf   :  { %2828 = vmatprep.subr.bf16.mxu1 %v1000_v10 }
 0x5c0   :  { %2829 = vmatpush3.bf16.msra.mxu1 %v1000_v10  ;;  %v3694_v10 = vpop.permute.xlu1 %1044 }
 0x5c3   :  { %2831 = vmatmul.mubr.msk.bf16.vlgmr.msra.gmra.mrb[16].mxu1 %vm149_vm0, %v3656_v36 }
 0x5c4   :  { %2834 = vmatprep.mubr.msk.bf16.mxu1 %vm149_vm0, %v3661_v37 }
 0x5cb   :  { %2835 = vmatmul.mubr.msk.bf16.gmra.mrb[20].mxu1 %vm149_vm0, %v3670_v40 }
 0x696   :  { %v2832_v26 = vpop.f32.mrb[16].mxu1 }
 0x697   :  { %v1132_v28 = vadd.f32 %v2832_v26, %v3685_v15  ;;  %v1123_v32 = vpop.f32.mrb[17].mxu1  ;;  %v3697_v26 = vpop.permute.xlu0 %1049 }
 0x698   :  { %v1124_v34 = vadd.f32 %v1123_v32, %v3681_v1  ;;  %v2833_v35 = vpop.f32.mrb[18].mxu1 }
 0x699   :  { %v1156_v48 = vmul.f32 0.01, %v1132_v28  ;;  %v1135_v49 = vadd.f32 %v2833_v35, %v3687_v16  ;;  %v1126_v54 = vpop.f32.mrb[19].mxu1  ;;  %v3700_v35 = vpop.permute.xlu1 %1054 }
 0x69a   :  { %v1154_v17 = vmul.f32 0.01, %v1124_v34  ;;  %v1127_v24 = vadd.f32 %v1126_v54, %v3683_v14 }
 0x69b   :  { %v1157_v0 = vmul.f32 0.01, %v1135_v49  ;;  %v1164_v22 = vmax.f32 %v1132_v28, %v1156_v48 }
 0x69c   :  { %v1155_v60 = vmul.f32 0.01, %v1127_v24  ;;  %v1162_v12 = vmax.f32 %v1124_v34, %v1154_v17 }
 0x69d   :  { %v1165_v39 = vmax.f32 %v1135_v49, %v1157_v0 }
 0x69e   :  { %v1163_v30 = vmax.f32 %v1127_v24, %v1155_v60  ;;  %v2836_v3 = vpop.f32.mrb[20].mxu1 }
 0x69f   :  { %v1148_v32 = vadd.f32 %v2836_v3, %v3697_v26  ;;  %v1139_v8 = vpop.f32.mrb[21].mxu1  ;;  %v1179_v2 = vpack.c.bf16 %v1165_v39, %v1164_v22 }
 0x6a0   :  { %v1140_v4 = vadd.f32 %v1139_v8, %v3690_v33  ;;  %v2837_v31 = vpop.f32.mrb[22].mxu1  ;;  %v1178_v45 = vpack.c.bf16 %v1163_v30, %v1162_v12  ;;  %v3735_v12 = vpop.permute.xlu1 %1197 }
 0x6a1   :  { %v1160_v54 = vmul.f32 0.01, %v1148_v32  ;;  %v1151_v25 = vadd.f32 %v2837_v31, %v3700_v35  ;;  %v1142_v28 = vpop.f32.mrb[23].mxu1  ;;  %v3708_v31 = vld [vmem:[%s4026_s4 + $0x8] sm:$0xff]  }
 0x6a2   :  { %v1158_v0 = vmul.f32 0.01, %v1140_v4  ;;  %v1143_v48 = vadd.f32 %v1142_v28, %v3694_v10  ;;  %2838 = vmatprep.subr.bf16.mxu0 %v1178_v45 }
 0x6a3   :  { %v1161_v60 = vmul.f32 0.01, %v1151_v25  ;;  %2839 = vmatpush3.bf16.msra.mxu0 %v1178_v45  ;;  %v1168_v3 = vmax.f32 %v1148_v32, %v1160_v54  ;;  %v3713_v45 = vld [vmem:[%s4026_s4 + $0x10] sm:$0xff]  }
 0x6a4   :  { %v1159_v17 = vmul.f32 0.01, %v1143_v48  ;;  %2840 = vmatprep.subr.bf16.mxu0 %v1179_v2  ;;  %v1166_v39 = vmax.f32 %v1140_v4, %v1158_v0  ;;  %v3733_v4 = vpop.permute.xlu0 %1192  ;;  %v3739_v49 = vpop.permute.xlu1 %1207 }
 0x6a5   :  { %v1169_v22 = vmax.f32 %v1151_v25, %v1161_v60  ;;  %v3722_v25 = vld [vmem:[%s4026_s4 + $0x18] sm:$0xff]  }
 0x6a6   :  { %v1167_v24 = vmax.f32 %v1143_v48, %v1159_v17 }
 0x6a7   :  { %2841 = vmatpush3.bf16.msra.mxu0 %v1179_v2  ;;  %v1181_v8 = vpack.c.bf16 %v1169_v22, %v1168_v3  ;;  %v3729_v2 = vld [vmem:[%s4029_s6] sm:$0xff]  }
 0x6a8   :  { %v1180_v34 = vpack.c.bf16 %v1167_v24, %v1166_v39  ;;  %2862 = vmatprep.mubr.msk.bf16.mxu1 %vm325_vm1, %v3729_v2  ;;  %v3737_v30 = vpop.permute.xlu0 %1202  ;;  %v3746_v39 = vpop.permute.xlu1 %1217 }
 0x6aa   :  { %2842 = vmatprep.subr.bf16.mxu0 %v1180_v34 }
 0x6ab   :  { %2843 = vmatpush3.bf16.msra.mxu0 %v1180_v34 }
 0x6ac   :  { %2844 = vmatprep.subr.bf16.mxu0 %v1181_v8  ;;  %v3742_v0 = vpop.permute.xlu0 %1212 }
 0x6af   :  { %2845 = vmatpush3.bf16.msra.mxu0 %v1181_v8 }
 0x6b2   :  { %2847 = vmatmul.mubr.msk.bf16.vlgmr.msra.gmra.mrb[24].mxu0 %vm325_vm1, %v3708_v31 }
 0x6b3   :  { %2850 = vmatprep.mubr.msk.bf16.mxu0 %vm325_vm1, %v3713_v45 }
 0x6ba   :  { %2851 = vmatmul.mubr.msk.bf16.gmra.mrb[28].mxu0 %vm325_vm1, %v3722_v25 }
 0x785   :  { %v2848_v32 = vpop.f32.mrb[24].mxu0 }
 0x786   :  { %v1305_v54 = vadd.f32 %v2848_v32, %v3737_v30  ;;  %v1296_v28 = vpop.f32.mrb[25].mxu0  ;;  %v3749_v32 = vpop.permute.xlu0 %1222 }
 0x787   :  { %v1297_v48 = vadd.f32 %v1296_v28, %v3733_v4  ;;  %v2849_v60 = vpop.f32.mrb[26].mxu0 }
 0x788   :  { %v1329_v17 = vmul.f32 0.01, %v1305_v54  ;;  %v1308_v3 = vadd.f32 %v2849_v60, %v3739_v49  ;;  %v1299_v22 = vpop.f32.mrb[27].mxu0  ;;  %v3752_v60 = vpop.permute.xlu1 %1227 }
 0x789   :  { %v1327_v24 = vmul.f32 0.01, %v1297_v48  ;;  %v1300_v8 = vadd.f32 %v1299_v22, %v3735_v12 }
 0x78a   :  { %v1330_v34 = vmul.f32 0.01, %v1308_v3  ;;  %v1337_v20 = vmax.f32 %v1305_v54, %v1329_v17 }
 0x78b   :  { %v1328_v38 = vmul.f32 0.01, %v1300_v8  ;;  %v1335_v18 = vmax.f32 %v1297_v48, %v1327_v24 }
 0x78c   :  { %v1338_v21 = vmax.f32 %v1308_v3, %v1330_v34  ;;  %v3771_v34 = vpop.permute.xlu0 %1362 }
 0x78d   :  { %v1336_v19 = vmax.f32 %v1300_v8, %v1328_v38  ;;  %v2852_v29 = vpop.f32.mrb[28].mxu0 }
 0x78e   :  { %v1321_v28 = vadd.f32 %v2852_v29, %v3749_v32  ;;  %v1312_v13 = vpop.f32.mrb[29].mxu0  ;;  %v1348_v53 = vpack.c.bf16 %v1338_v21, %v1337_v20 }
 0x78f   :  { %v1313_v7 = vadd.f32 %v1312_v13, %v3742_v0  ;;  %v2853_v27 = vpop.f32.mrb[30].mxu0  ;;  %v1347_v52 = vpack.c.bf16 %v1336_v19, %v1335_v18  ;;  %v3760_v18 = vld [vmem:[%s4029_s6 + $0x8] sm:$0xff]   ;;  %v3037_v19 = vld [vmem:[%s4030_s8] sm:$0xff]  }
 0x790   :  { %v1333_v22 = vmul.f32 0.01, %v1321_v28  ;;  %v1324_v11 = vadd.f32 %v2853_v27, %v3752_v60  ;;  %v1315_v54 = vpop.f32.mrb[31].mxu0  ;;  %v3768_v27 = vpop.permute.xlu1 %1357 }
 0x791   :  { %v1331_v17 = vmul.f32 0.01, %v1313_v7  ;;  %v1316_v3 = vadd.f32 %v1315_v54, %v3746_v39  ;;  %2854 = vmatprep.subr.bf16.mxu1 %v1347_v52 }
 0x792   :  { %v1334_v38 = vmul.f32 0.01, %v1324_v11  ;;  %2855 = vmatpush3.bf16.msra.mxu1 %v1347_v52  ;;  %v1341_v29 = vmax.f32 %v1321_v28, %v1333_v22 }
 0x793   :  { %v1332_v48 = vmul.f32 0.01, %v1316_v3  ;;  %2856 = vmatprep.subr.bf16.mxu1 %v1348_v53  ;;  %v1339_v21 = vmax.f32 %v1313_v7, %v1331_v17 }
 0x794   :  { %v1342_v20 = vmax.f32 %v1324_v11, %v1334_v38 }
 0x795   :  { %v1340_v24 = vmax.f32 %v1316_v3, %v1332_v48 }
 0x796   :  { %2857 = vmatpush3.bf16.msra.mxu1 %v1348_v53  ;;  %v1350_v13 = vpack.c.bf16 %v1342_v20, %v1341_v29  ;;  %v3774_v20 = vpop.permute.xlu0 %1372 }
 0x797   :  { %v1349_v8 = vpack.c.bf16 %v1340_v24, %v1339_v21  ;;  %v3777_v24 = vpop.permute.xlu1 %1367 }
 0x799   :  { %2858 = vmatprep.subr.bf16.mxu1 %v1349_v8 }
 0x79a   :  { %2859 = vmatpush3.bf16.msra.mxu1 %v1349_v8 }
 0x79b   :  { %2860 = vmatprep.subr.bf16.mxu1 %v1350_v13 }
 0x79e   :  { %2861 = vmatpush3.bf16.msra.mxu1 %v1350_v13 }
 0x7a1   :  { %2863 = vmatmul.mubr.msk.bf16.vlgmr.msra.gmra.mrb[24].mxu1 %vm325_vm1, %v3760_v18 }
 0x7a2   :  { %2868 = vmatprep.mubr.msk.bf16.mxu1 %vm149_vm0, %v3037_v19 }
 0x874   :  { %v2864_v11 = vpop.f32.mrb[24].mxu1 }
 0x875   :  { %v1425_v52 = vpop.f32.mrb[25].mxu1  ;;  %v1434_v13 = vadd.f32 %v2864_v11, %v3777_v24 }
 0x876   :  { %v1426_v7 = vadd.f32 %v1425_v52, %v3768_v27  ;;  %v2865_v53 = vpop.f32.mrb[26].mxu1 }
 0x877   :  { %v1428_v28 = vpop.f32.mrb[27].mxu1  ;;  %v1437_v21 = vadd.f32 %v2865_v53, %v3774_v20  ;;  %v1442_v19 = vsub.f32 %v3643_v55, %v1434_v13 }
 0x878   :  { %3058 = vtanh.f32 %v1426_v7  ;;  %v1429_v22 = vadd.f32 %v1428_v28, %v3771_v34 }
 0x879   :  { %v1443_v8 = vsub.f32 %v3646_v63, %v1437_v21 }
 0x87a   :  { %3060 = vtanh.f32 %v1429_v22 }
 0x87b   :  { %v1445_v28 = vmul.f32 0.0, %v1443_v8 }
 0x882   :  { %v3059_v54 = vpop.eup %3058 }
 0x883   :  { %v1446_v17 = vsub.f32 0.0, %v3059_v54 }
 0x884   :  { %v3061_v3 = vpop.eup %3060 }
 0x885   :  { %v1448_v38 = vmul.f32 1.442695, %v1446_v17  ;;  %v1447_v48 = vsub.f32 0.0, %v3061_v3 }
 0x887   :  { %3062 = vpow2.f32 %v1448_v38  ;;  %v1450_v29 = vmul.f32 1.442695, %v1447_v48  ;;  %v1472_v48 = vpop.permute.xlu0 %1471 }
 0x889   :  { %3064 = vpow2.f32 %v1450_v29  ;;  %v1477_v29 = vpop.permute.xlu1 %1476 }
 0x88b   :  { %v1482_v21 = vpop.permute.xlu0 %1481 }
 0x891   :  { %v3063_v52 = vpop.eup %3062 }
 0x892   :  { %v1452_v7 = vmul.f32 %v3063_v52, %v1442_v19  ;;  %v1487_v52 = vpop.permute.xlu1 %1486 }
 0x893   :  { %v3065_v22 = vpop.eup %3064 }
 0x894   :  { %v1454_v54 = vadd.f32 %v1452_v7, %v3649_v6  ;;  %v1453_v17 = vmul.f32 %v3065_v22, %v1445_v28  ;;  %v3038_v6 = vld [vmem:[%s4030_s8 + $0x8] sm:$0xff]  }
 0x896   :  { %3066 = vtanh.f32 %v1454_v54  ;;  %v1455_v3 = vadd.f32 %v1453_v17, %v3646_v63  ;;  %v3039_v63 = vld [vmem:[%s4032_s10] sm:$0xff]  }
 0x897   :  { %2876 = vmatprep.mubr.msk.bf16.mxu0 %vm1602_vm3, %v3039_v63 }
 0x898   :  { %3068 = vtanh.f32 %v1455_v3 }
 0x8a0   :  { %v3784_v53 = vpop.eup %3066 }
 0x8a1   :  { %2442 = vst.msk [vmem:[%s4031_s14 + $0x10] sm:$0xff] %vm2439_vm2, %v3784_v53 }
 0x8a2   :  { %v3069_v55 = vpop.eup %3068 }
 0x8a3   :  { %v1459_v11 = vmul.f32 0.0, %v3069_v55 }
 0x8a5   :  { %v1464_v38 = vpack.c.bf16 %v1459_v11, %v3784_v53 }
 0x8a7   :  { %2866 = vmatprep.subr.bf16.mxu1 %v1464_v38 }
 0x8a8   :  { %2867 = vmatpush3.bf16.msra.mxu1 %v1464_v38 }
 0x8ab   :  { %2869 = vmatmul.mubr.msk.bf16.vlgmr.msra.gmra.mrb[28].mxu1 %vm149_vm0, %v3038_v6 }
 0x97e   :  { %v2870_v13 = vpop.f32.mrb[28].mxu1 }
 0x97f   :  { %v1548_v8 = vadd.f32 %v2870_v13, %v1482_v21  ;;  %v1539_v19 = vpop.f32.mrb[29].mxu1  ;;  %v1575_v21 = vpop.permute.xlu0 %1574 }
 0x980   :  { %v1540_v7 = vadd.f32 %v1539_v19, %v1472_v48  ;;  %v2871_v28 = vpop.f32.mrb[30].mxu1  ;;  %v3040_v48 = vld [vmem:[%s4032_s10 + $0x8] sm:$0xff]  }
 0x981   :  { %v1556_v22 = vmul.f32 0.01, %v1548_v8  ;;  %v1551_v54 = vadd.f32 %v2871_v28, %v1487_v52  ;;  %v1542_v17 = vpop.f32.mrb[31].mxu1 }
 0x982   :  { %v1554_v3 = vmul.f32 0.01, %v1540_v7  ;;  %v1543_v55 = vadd.f32 %v1542_v17, %v1477_v29  ;;  %v3115_v29 = vmov 0.0  }
 0x983   :  { %v1557_v11 = vmul.f32 0.01, %v1551_v54  ;;  %v1560_v6 = vmax.f32 %v1548_v8, %v1556_v22  ;;  %2880 = vmatprep.subr.bf16.mxu1 %v3115_v29  ;;  %2884 = vmatprep.mubr.msk.bf16.mxu1 %vm3116_vm4, %v3115_v29 }
 0x984   :  { %v1555_v38 = vmul.f32 0.01, %v1543_v55  ;;  %v1558_v59 = vmax.f32 %v1540_v7, %v1554_v3 }
 0x985   :  { %v1561_v41 = vmax.f32 %v1551_v54, %v1557_v11 }
 0x986   :  { %v1559_v63 = vmax.f32 %v1543_v55, %v1555_v38 }
 0x987   :  { %v1567_v62 = vpack.c.bf16 %v1561_v41, %v1560_v6  ;;  %v1580_v41 = vpop.permute.xlu1 %1579 }
 0x988   :  { %v1566_v58 = vpack.c.bf16 %v1559_v63, %v1558_v59  ;;  %v1585_v59 = vpop.permute.xlu0 %1584 }
 0x98a   :  { %2872 = vmatprep.subr.bf16.mxu0 %v1566_v58 }
 0x98b   :  { %2873 = vmatpush3.bf16.msra.mxu0 %v1566_v58  ;;  %v1590_v19 = vpop.permute.xlu1 %1589 }
 0x98c   :  { %2874 = vmatprep.subr.bf16.mxu0 %v1567_v62 }
 0x98f   :  { %2875 = vmatpush3.bf16.msra.mxu0 %v1567_v62 }
 0x992   :  { %2877 = vmatmul.mubr.msk.bf16.vlgmr.msra.gmra.mrb[32].mxu0 %vm1602_vm3, %v3040_v48 }
 0x993   :  { %2890 = vmatprep.mubr.msk.bf16.mxu0 %vm149_vm0, %v3624_v5 }
 0xa65   :  { %v2878_v13 = vpop.f32.mrb[32].mxu0 }
 0xa66   :  { %v1652_v58 = vadd.f32 %v2878_v13, %v1585_v59  ;;  %v1643_v8 = vpop.f32.mrb[33].mxu0 }
 0xa67   :  { %v1644_v52 = vadd.f32 %v1643_v8, %v1575_v21  ;;  %v2879_v7 = vpop.f32.mrb[34].mxu0  ;;  %v3041_v21 = vld [vmem:[%s4033_s12] sm:$0xff]  }
 0xa68   :  { %v1660_v28 = vmul.f32 0.01, %v1652_v58  ;;  %v1655_v62 = vadd.f32 %v2879_v7, %v1590_v19  ;;  %v1646_v22 = vpop.f32.mrb[35].mxu0  ;;  %v3818_v7 = vld [vmem:[%s4034_s1] sm:$0xff] }
 0xa69   :  { %v1658_v54 = vmul.f32 0.01, %v1644_v52  ;;  %v1647_v17 = vadd.f32 %v1646_v22, %v1580_v41  ;;  %v1675_v41 = vpop.permute.xlu0 %1674 }
 0xa6a   :  { %v1661_v3 = vmul.f32 0.01, %v1655_v62  ;;  %v1664_v55 = vmax.f32 %v1652_v58, %v1660_v28 }
 0xa6b   :  { %v1659_v5 = vmul.f32 0.01, %v1647_v17  ;;  %v1662_v38 = vmax.f32 %v1644_v52, %v1658_v54 }
 0xa6c   :  { %v1665_v11 = vmax.f32 %v1655_v62, %v1661_v3 }
 0xa6d   :  { %v1663_v6 = vmax.f32 %v1647_v17, %v1659_v5 }
 0xa6e   :  { %v1669_v63 = vpack.c.bf16 %v1665_v11, %v1664_v55 }
 0xa6f   :  { %v1668_v48 = vpack.c.bf16 %v1663_v6, %v1662_v38 }
 0xa71   :  { %2881 = vmatpush3.bf16.msra.mxu1 %v1668_v48 }
 0xa72   :  { %2882 = vmatprep.subr.bf16.mxu1 %v3115_v29 }
 0xa75   :  { %2883 = vmatpush3.bf16.msra.mxu1 %v1669_v63 }
 0xa78   :  { %2885 = vmatmul.mubr.msk.bf16.vlgmr.msra.gmra.mrb[32].mxu1 %vm1602_vm3, %v3041_v21 }
 0xa79   :  { %2906 = vmatprep.mubr.msk.bf16.mxu1 %vm325_vm1, %v3677_v50 }
 0xb4b   :  { %v1723_v59 = vpop.f32.mrb[32].mxu1 }
 0xb4c   :  { %v1724_v13 = vadd.f32 %v1723_v59, %v1675_v41  ;;  %v2886_v58 = vpop.f32.mrb[33].mxu1 }
 0xb4d   :  { %v1726_v8 = vpop.f32.mrb[34].mxu1 }
 0xb4e   :  { %v1729_v19 = vadd.f32 %v3784_v53, %v1724_v13  ;;  %v2887_v52 = vpop.f32.mrb[35].mxu1 }
 0xb50   :  { %3070 = vtanh.f32 %v1729_v19 }
 0xb5a   :  { %v3813_v29 = vpop.eup %3070 }
 0xb5b   :  { %2443 = vst.msk [vmem:[%s4031_s14 + $0x18] sm:$0xff] %vm2439_vm2, %v3813_v29  ;;  %v3826_v50 = vmul.f32 0.0, %v3813_v29 }
 0xb5d   :  { %v1733_v53 = vpack.c.bf16 %v3818_v7, %v3826_v50 }
 0xb5f   :  { %2888 = vmatprep.subr.bf16.mxu0 %v1733_v53 }
 0xb60   :  { %2889 = vmatpush3.bf16.msra.mxu0 %v1733_v53 }
 0xb63   :  { %2891 = vmatmul.mubr.msk.bf16.vlgmr.msra.gmra.mrb[36].mxu0 %vm149_vm0, %v3656_v36 }
 0xb64   :  { %2894 = vmatprep.mubr.msk.bf16.mxu0 %vm149_vm0, %v3661_v37 }
 0xb6b   :  { %2895 = vmatmul.mubr.msk.bf16.gmra.mrb[40].mxu0 %vm149_vm0, %v3670_v40 }
 0xb6c   :  { %2922 = vmatprep.mubr.msk.bf16.mxu0 %vm325_vm1, %v3729_v2 }
 0xc36   :  { %v2892_v28 = vpop.f32.mrb[36].mxu0 }
 0xc37   :  { %v1777_v62 = vadd.f32 %v2892_v28, %v3685_v15  ;;  %v1768_v22 = vpop.f32.mrb[37].mxu0 }
 0xc38   :  { %v1769_v54 = vadd.f32 %v1768_v22, %v3681_v1  ;;  %v2893_v17 = vpop.f32.mrb[38].mxu0 }
 0xc39   :  { %v1801_v3 = vmul.f32 0.01, %v1777_v62  ;;  %v1780_v5 = vadd.f32 %v2893_v17, %v3687_v16  ;;  %v1771_v36 = vpop.f32.mrb[39].mxu0 }
 0xc3a   :  { %v1799_v55 = vmul.f32 0.01, %v1769_v54  ;;  %v1772_v37 = vadd.f32 %v1771_v36, %v3683_v14 }
 0xc3b   :  { %v1802_v11 = vmul.f32 0.01, %v1780_v5  ;;  %v1809_v40 = vmax.f32 %v1777_v62, %v1801_v3 }
 0xc3c   :  { %v1800_v38 = vmul.f32 0.01, %v1772_v37  ;;  %v1807_v63 = vmax.f32 %v1769_v54, %v1799_v55 }
 0xc3d   :  { %v1810_v6 = vmax.f32 %v1780_v5, %v1802_v11 }
 0xc3e   :  { %v1808_v2 = vmax.f32 %v1772_v37, %v1800_v38  ;;  %v2896_v48 = vpop.f32.mrb[40].mxu0 }
 0xc3f   :  { %v1793_v15 = vadd.f32 %v2896_v48, %v3697_v26  ;;  %v1784_v21 = vpop.f32.mrb[41].mxu0  ;;  %v1816_v41 = vpack.c.bf16 %v1810_v6, %v1809_v40 }
 0xc40   :  { %v1785_v1 = vadd.f32 %v1784_v21, %v3690_v33  ;;  %v2897_v59 = vpop.f32.mrb[42].mxu0  ;;  %v1815_v13 = vpack.c.bf16 %v1808_v2, %v1807_v63 }
 0xc41   :  { %v1805_v16 = vmul.f32 0.01, %v1793_v15  ;;  %v1796_v58 = vadd.f32 %v2897_v59, %v3700_v35  ;;  %v1787_v8 = vpop.f32.mrb[43].mxu0 }
 0xc42   :  { %v1803_v14 = vmul.f32 0.01, %v1785_v1  ;;  %v1788_v19 = vadd.f32 %v1787_v8, %v3694_v10  ;;  %2898 = vmatprep.subr.bf16.mxu1 %v1815_v13 }
 0xc43   :  { %v1806_v52 = vmul.f32 0.01, %v1796_v58  ;;  %2899 = vmatpush3.bf16.msra.mxu1 %v1815_v13  ;;  %v1813_v28 = vmax.f32 %v1793_v15, %v1805_v16 }
 0xc44   :  { %v1804_v53 = vmul.f32 0.01, %v1788_v19  ;;  %2900 = vmatprep.subr.bf16.mxu1 %v1816_v41  ;;  %v1811_v62 = vmax.f32 %v1785_v1, %v1803_v14 }
 0xc45   :  { %v1814_v26 = vmax.f32 %v1796_v58, %v1806_v52 }
 0xc46   :  { %v1812_v22 = vmax.f32 %v1788_v19, %v1804_v53 }
 0xc47   :  { %2901 = vmatpush3.bf16.msra.mxu1 %v1816_v41  ;;  %v1818_v33 = vpack.c.bf16 %v1814_v26, %v1813_v28 }
 0xc48   :  { %v1817_v54 = vpack.c.bf16 %v1812_v22, %v1811_v62 }
 0xc4a   :  { %2902 = vmatprep.subr.bf16.mxu1 %v1817_v54 }
 0xc4b   :  { %2903 = vmatpush3.bf16.msra.mxu1 %v1817_v54 }
 0xc4c   :  { %2904 = vmatprep.subr.bf16.mxu1 %v1818_v33 }
 0xc4f   :  { %2905 = vmatpush3.bf16.msra.mxu1 %v1818_v33 }
 0xc52   :  { %2907 = vmatmul.mubr.msk.bf16.vlgmr.msra.gmra.mrb[36].mxu1 %vm325_vm1, %v3708_v31 }
 0xc53   :  { %2910 = vmatprep.mubr.msk.bf16.mxu1 %vm325_vm1, %v3713_v45 }
 0xc5a   :  { %2911 = vmatmul.mubr.msk.bf16.gmra.mrb[40].mxu1 %vm325_vm1, %v3722_v25 }
 0xc5b   :  { %2944 = vmatprep.mubr.msk.bf16.mxu1 %vm325_vm1, %v3546_v42 }
 0xd25   :  { %v2908_v10 = vpop.f32.mrb[36].mxu1 }
 0xd26   :  { %v1862_v35 = vadd.f32 %v2908_v10, %v3737_v30  ;;  %v1853_v17 = vpop.f32.mrb[37].mxu1 }
 0xd27   :  { %v1854_v3 = vadd.f32 %v1853_v17, %v3733_v4  ;;  %v2909_v5 = vpop.f32.mrb[38].mxu1 }
 0xd28   :  { %v1886_v36 = vmul.f32 0.01, %v1862_v35  ;;  %v1865_v55 = vadd.f32 %v2909_v5, %v3739_v49  ;;  %v1856_v31 = vpop.f32.mrb[39].mxu1 }
 0xd29   :  { %v1884_v37 = vmul.f32 0.01, %v1854_v3  ;;  %v1857_v45 = vadd.f32 %v1856_v31, %v3735_v12 }
 0xd2a   :  { %v1887_v11 = vmul.f32 0.01, %v1865_v55  ;;  %v1894_v25 = vmax.f32 %v1862_v35, %v1886_v36 }
 0xd2b   :  { %v1885_v38 = vmul.f32 0.01, %v1857_v45  ;;  %v1892_v6 = vmax.f32 %v1854_v3, %v1884_v37 }
 0xd2c   :  { %v1895_v40 = vmax.f32 %v1865_v55, %v1887_v11 }
 0xd2d   :  { %v1893_v42 = vmax.f32 %v1857_v45, %v1885_v38  ;;  %v2912_v63 = vpop.f32.mrb[40].mxu1 }
 0xd2e   :  { %v1878_v30 = vadd.f32 %v2912_v63, %v3749_v32  ;;  %v1869_v2 = vpop.f32.mrb[41].mxu1  ;;  %v1901_v48 = vpack.c.bf16 %v1895_v40, %v1894_v25 }
 0xd2f   :  { %v1870_v4 = vadd.f32 %v1869_v2, %v3742_v0  ;;  %v2913_v15 = vpop.f32.mrb[42].mxu1  ;;  %v1900_v21 = vpack.c.bf16 %v1893_v42, %v1892_v6 }
 0xd30   :  { %v1890_v49 = vmul.f32 0.01, %v1878_v30  ;;  %v1881_v41 = vadd.f32 %v2913_v15, %v3752_v60  ;;  %v1872_v1 = vpop.f32.mrb[43].mxu1 }
 0xd31   :  { %v1888_v12 = vmul.f32 0.01, %v1870_v4  ;;  %v1873_v59 = vadd.f32 %v1872_v1, %v3746_v39  ;;  %2914 = vmatprep.subr.bf16.mxu0 %v1900_v21  ;;  %v3096_v39 = vld [vmem:[%s4022_s2 + $0x20] sm:$0xff]  }
 0xd32   :  { %v1891_v13 = vmul.f32 0.01, %v1881_v41  ;;  %2915 = vmatpush3.bf16.msra.mxu0 %v1900_v21  ;;  %v1898_v58 = vmax.f32 %v1878_v30, %v1890_v49 }
 0xd33   :  { %v1889_v16 = vmul.f32 0.01, %v1873_v59  ;;  %2916 = vmatprep.subr.bf16.mxu0 %v1901_v48  ;;  %v1896_v8 = vmax.f32 %v1870_v4, %v1888_v12 }
 0xd34   :  { %v1899_v32 = vmax.f32 %v1881_v41, %v1891_v13 }
 0xd35   :  { %v1897_v14 = vmax.f32 %v1873_v59, %v1889_v16 }
 0xd36   :  { %2917 = vmatpush3.bf16.msra.mxu0 %v1901_v48  ;;  %v1903_v0 = vpack.c.bf16 %v1899_v32, %v1898_v58 }
 0xd37   :  { %v1902_v19 = vpack.c.bf16 %v1897_v14, %v1896_v8 }
 0xd39   :  { %2918 = vmatprep.subr.bf16.mxu0 %v1902_v19 }
 0xd3a   :  { %2919 = vmatpush3.bf16.msra.mxu0 %v1902_v19 }
 0xd3b   :  { %2920 = vmatprep.subr.bf16.mxu0 %v1903_v0 }
 0xd3e   :  { %2921 = vmatpush3.bf16.msra.mxu0 %v1903_v0 }
 0xd41   :  { %2923 = vmatmul.mubr.msk.bf16.vlgmr.msra.gmra.mrb[44].mxu0 %vm325_vm1, %v3760_v18 }
 0xd42   :  { %2928 = vmatprep.mubr.msk.bf16.mxu0 %vm149_vm0, %v3096_v39 }
 0xe14   :  { %v2924_v60 = vpop.f32.mrb[44].mxu0 }
 0xe15   :  { %v1938_v52 = vpop.f32.mrb[45].mxu0  ;;  %v1947_v35 = vadd.f32 %v2924_v60, %v3777_v24 }
 0xe16   :  { %v1939_v53 = vadd.f32 %v1938_v52, %v3768_v27  ;;  %v2925_v28 = vpop.f32.mrb[46].mxu0  ;;  %v3102_v52 = vld [vmem:[%s4026_s4 + $0x38] sm:$0xff]  }
 0xe17   :  { %v1941_v26 = vpop.f32.mrb[47].mxu0  ;;  %v1950_v27 = vadd.f32 %v2925_v28, %v3774_v20  ;;  %v3097_v20 = vld [vmem:[%s4022_s2 + $0x28] sm:$0xff]  }
 0xe18   :  { %3072 = vtanh.f32 %v1939_v53  ;;  %v1942_v62 = vadd.f32 %v1941_v26, %v3771_v34  ;;  %v3103_v53 = vld [vmem:[%s4022_s2 + $0x40] sm:$0xff]  }
 0xe1a   :  { %3074 = vtanh.f32 %v1942_v62 }
 0xe22   :  { %v3073_v22 = vpop.eup %3072 }
 0xe23   :  { %v1955_v33 = vmul.f32 1.442695, %v3073_v22  ;;  %v4097_v22 = vld [vmem:[#allocation22_spill] sm:$0xff] }
 0xe24   :  { %v3075_v54 = vpop.eup %3074 }
 0xe25   :  { %3076 = vpow2.f32 %v1955_v33  ;;  %v1957_v18 = vmul.f32 1.442695, %v3075_v54 }
 0xe27   :  { %3078 = vpow2.f32 %v1957_v18 }
 0xe2f   :  { %v3077_v10 = vpop.eup %3076 }
 0xe30   :  { %v1959_v17 = vmul.f32 %v3077_v10, %v3813_v29  ;;  %v3098_v29 = vld [vmem:[%s4022_s2 + $0x30] sm:$0xff]   ;;  %v4098_v10 = vld [vmem:[#allocation24_spill] sm:$0xff] }
 0xe31   :  { %v3079_v3 = vpop.eup %3078 }
 0xe32   :  { %v1960_v5 = vmul.f32 %v3079_v3, %v3818_v7  ;;  %v1961_v36 = vadd.f32 %v1959_v17, %v1947_v35 }
 0xe34   :  { %v1962_v55 = vadd.f32 %v1960_v5, %v1950_v27  ;;  %v3878_v37 = vadd.f32 %v1961_v36, %v3826_v50  ;;  %v4099_v27 = vld [vmem:[#allocation23_spill] sm:$0xff] }
 0xe36   :  { %v1964_v34 = vmul.f32 0.0, %v1962_v55 }
 0xe38   :  { %v3875_v31 = vadd.f32 %v1964_v34, %v3818_v7  ;;  %v3099_v7 = vld [vmem:[%s4022_s2 + $0x38] sm:$0xff]  }
 0xe3a   :  { %v3881_v45 = vmul.f32 0.0, %v3875_v31 }
 0xe3c   :  { %v1969_v24 = vpack.c.bf16 %v3881_v45, %v3878_v37 }
 0xe3e   :  { %2926 = vmatprep.subr.bf16.mxu0 %v1969_v24 }
 0xe3f   :  { %2927 = vmatpush3.bf16.msra.mxu0 %v1969_v24 }
 0xe42   :  { %2929 = vmatmul.mubr.msk.bf16.vlgmr.msra.gmra.mrb[48].mxu0 %vm149_vm0, %v3097_v20 }
 0xe43   :  { %2932 = vmatprep.mubr.msk.bf16.mxu0 %vm149_vm0, %v3098_v29 }
 0xe4a   :  { %2933 = vmatmul.mubr.msk.bf16.gmra.mrb[52].mxu0 %vm149_vm0, %v3099_v7 }
 0xe4b   :  { %2960 = vmatprep.mubr.msk.bf16.mxu0 %vm325_vm1, %v3589_v56 }
 0xf15   :  { %v2930_v50 = vpop.f32.mrb[48].mxu0 }
 0xf16   :  { %v2013_v11 = vadd.f32 %v2930_v50, %v3554_v46  ;;  %v2004_v38 = vpop.f32.mrb[49].mxu0  ;;  %v4100_v50 = vld [vmem:[#allocation27_spill] sm:$0xff] }
 0xf17   :  { %v2005_v25 = vadd.f32 %v2004_v38, %v3550_v43  ;;  %v2931_v40 = vpop.f32.mrb[50].mxu0 }
 0xf18   :  { %v2037_v6 = vmul.f32 0.01, %v2013_v11  ;;  %v2016_v42 = vadd.f32 %v2931_v40, %v3556_v47  ;;  %v2007_v63 = vpop.f32.mrb[51].mxu0 }
 0xf19   :  { %v2035_v30 = vmul.f32 0.01, %v2005_v25  ;;  %v2008_v2 = vadd.f32 %v2007_v63, %v3552_v44 }
 0xf1a   :  { %v2038_v48 = vmul.f32 0.01, %v2016_v42  ;;  %v2045_v15 = vmax.f32 %v2013_v11, %v2037_v6 }
 0xf1b   :  { %v2036_v4 = vmul.f32 0.01, %v2008_v2  ;;  %v2043_v49 = vmax.f32 %v2005_v25, %v2035_v30  ;;  %v4101_v25 = vld [vmem:[#allocation25_spill] sm:$0xff]  ;;  %v4102_v30 = vld [vmem:[#allocation28_spill] sm:$0xff] }
 0xf1c   :  { %v2046_v21 = vmax.f32 %v2016_v42, %v2038_v48 }
 0xf1d   :  { %v2044_v56 = vmax.f32 %v2008_v2, %v2036_v4  ;;  %v2934_v41 = vpop.f32.mrb[52].mxu0 }
 0xf1e   :  { %v2029_v46 = vadd.f32 %v2934_v41, %v3566_v9  ;;  %v2020_v1 = vpop.f32.mrb[53].mxu0  ;;  %v2052_v12 = vpack.c.bf16 %v2046_v21, %v2045_v15  ;;  %v4103_v15 = vld [vmem:[#allocation26_spill] sm:$0xff] }
 0xf1f   :  { %v2021_v43 = vadd.f32 %v2020_v1, %v3559_v51  ;;  %v2935_v59 = vpop.f32.mrb[54].mxu0  ;;  %v2051_v13 = vpack.c.bf16 %v2044_v56, %v2043_v49 }
 0xf20   :  { %v2041_v47 = vmul.f32 0.01, %v2029_v46  ;;  %v2032_v16 = vadd.f32 %v2935_v59, %v3569_v23  ;;  %v2023_v58 = vpop.f32.mrb[55].mxu0  ;;  %v3101_v23 = vld [vmem:[%s4026_s4 + $0x30] sm:$0xff]  }
 0xf21   :  { %v2039_v44 = vmul.f32 0.01, %v2021_v43  ;;  %v2024_v32 = vadd.f32 %v2023_v58, %v3563_v57  ;;  %2936 = vmatprep.subr.bf16.mxu1 %v2051_v13  ;;  %v3100_v57 = vld [vmem:[%s4026_s4 + $0x28] sm:$0xff]  }
 0xf22   :  { %v2042_v8 = vmul.f32 0.01, %v2032_v16  ;;  %2937 = vmatpush3.bf16.msra.mxu1 %v2051_v13  ;;  %v2049_v0 = vmax.f32 %v2029_v46, %v2041_v47  ;;  %v3104_v13 = vld [vmem:[%s4029_s6 + $0x18] sm:$0xff]   ;;  %v3105_v47 = vld [vmem:[%s4026_s4 + $0x40] sm:$0xff]  }
 0xf23   :  { %v2040_v14 = vmul.f32 0.01, %v2024_v32  ;;  %2938 = vmatprep.subr.bf16.mxu1 %v2052_v12  ;;  %v2047_v19 = vmax.f32 %v2021_v43, %v2039_v44  ;;  %v4104_v44 = vld [vmem:[#allocation29_spill] sm:$0xff] }
 0xf24   :  { %v2050_v9 = vmax.f32 %v2032_v16, %v2042_v8 }
 0xf25   :  { %v2048_v39 = vmax.f32 %v2024_v32, %v2040_v14 }
 0xf26   :  { %2939 = vmatpush3.bf16.msra.mxu1 %v2052_v12  ;;  %v2054_v51 = vpack.c.bf16 %v2050_v9, %v2049_v0  ;;  %v4105_v0 = vld [vmem:[#allocation30_spill] sm:$0xff] }
 0xf27   :  { %v2053_v60 = vpack.c.bf16 %v2048_v39, %v2047_v19 }
 0xf29   :  { %2940 = vmatprep.subr.bf16.mxu1 %v2053_v60 }
 0xf2a   :  { %2941 = vmatpush3.bf16.msra.mxu1 %v2053_v60 }
 0xf2b   :  { %2942 = vmatprep.subr.bf16.mxu1 %v2054_v51 }
 0xf2e   :  { %2943 = vmatpush3.bf16.msra.mxu1 %v2054_v51 }
 0xf31   :  { %2945 = vmatmul.mubr.msk.bf16.vlgmr.msra.gmra.mrb[44].mxu1 %vm325_vm1, %v3100_v57 }
 0xf32   :  { %2948 = vmatprep.mubr.msk.bf16.mxu1 %vm325_vm1, %v3101_v23  ;;  %v4106_v23 = vld [vmem:[#allocation31_spill] sm:$0xff] }
 0xf39   :  { %2949 = vmatmul.mubr.msk.bf16.gmra.mrb[48].mxu1 %vm325_vm1, %v3102_v52 }
 0xf3a   :  { %2966 = vmatprep.mubr.msk.bf16.mxu1 %vm149_vm0, %v3103_v53 }
0x1004   :  { %v2946_v28 = vpop.f32.mrb[44].mxu1 }
0x1005   :  { %v2098_v26 = vadd.f32 %v2946_v28, %v3597_v61  ;;  %v2089_v62 = vpop.f32.mrb[45].mxu1 }
0x1006   :  { %v2090_v33 = vadd.f32 %v2089_v62, %v4097_v22  ;;  %v2947_v54 = vpop.f32.mrb[46].mxu1 }
0x1007   :  { %v2122_v18 = vmul.f32 0.01, %v2098_v26  ;;  %v2101_v35 = vadd.f32 %v2947_v54, %v4098_v10  ;;  %v2092_v17 = vpop.f32.mrb[47].mxu1 }
0x1008   :  { %v2120_v3 = vmul.f32 0.01, %v2090_v33  ;;  %v2093_v5 = vadd.f32 %v2092_v17, %v4099_v27  ;;  %v3109_v27 = vld [vmem:[%s4029_s6 + $0x20] sm:$0xff]  }
0x1009   :  { %v2123_v36 = vmul.f32 0.01, %v2101_v35  ;;  %v2130_v34 = vmax.f32 %v2098_v26, %v2122_v18  ;;  %v4107_v26 = vld [vmem:[#allocation32_spill] sm:$0xff] }
0x100a   :  { %v2121_v55 = vmul.f32 0.01, %v2093_v5  ;;  %v2128_v20 = vmax.f32 %v2090_v33, %v2120_v3 }
0x100b   :  { %v2131_v24 = vmax.f32 %v2101_v35, %v2123_v36  ;;  %v4108_v36 = vld [vmem:[#allocation3_spill] sm:$0xff] }
0x100c   :  { %v2129_v29 = vmax.f32 %v2093_v5, %v2121_v55  ;;  %v2950_v7 = vpop.f32.mrb[48].mxu1 }
0x100d   :  { %v2114_v61 = vadd.f32 %v2950_v7, %v4100_v50  ;;  %v2105_v11 = vpop.f32.mrb[49].mxu1  ;;  %v2137_v38 = vpack.c.bf16 %v2131_v24, %v2130_v34  ;;  %v4109_v24 = vld [vmem:[#allocation2_spill] sm:$0xff]  ;;  %v4110_v50 = vld [vmem:[#allocation5_spill] sm:$0xff] }
0x100e   :  { %v2106_v40 = vadd.f32 %v2105_v11, %v4101_v25  ;;  %v2951_v6 = vpop.f32.mrb[50].mxu1  ;;  %v2136_v42 = vpack.c.bf16 %v2129_v29, %v2128_v20  ;;  %v4111_v25 = vld [vmem:[#allocation4_spill] sm:$0xff] }
0x100f   :  { %v2126_v63 = vmul.f32 0.01, %v2114_v61  ;;  %v2117_v2 = vadd.f32 %v2951_v6, %v4102_v30  ;;  %v2108_v48 = vpop.f32.mrb[51].mxu1 }
0x1010   :  { %v2124_v4 = vmul.f32 0.01, %v2106_v40  ;;  %v2109_v21 = vadd.f32 %v2108_v48, %v4103_v15  ;;  %2952 = vmatprep.subr.bf16.mxu0 %v2136_v42  ;;  %v4112_v15 = vld [vmem:[#allocation8_spill] sm:$0xff] }
0x1011   :  { %v2127_v49 = vmul.f32 0.01, %v2117_v2  ;;  %2953 = vmatpush3.bf16.msra.mxu0 %v2136_v42  ;;  %v2134_v41 = vmax.f32 %v2114_v61, %v2126_v63 }
0x1012   :  { %v2125_v56 = vmul.f32 0.01, %v2109_v21  ;;  %2954 = vmatprep.subr.bf16.mxu0 %v2137_v38  ;;  %v2132_v1 = vmax.f32 %v2106_v40, %v2124_v4 }
0x1013   :  { %v2135_v46 = vmax.f32 %v2117_v2, %v2127_v49 }
0x1014   :  { %v2133_v12 = vmax.f32 %v2109_v21, %v2125_v56 }
0x1015   :  { %2955 = vmatpush3.bf16.msra.mxu0 %v2137_v38  ;;  %v2139_v43 = vpack.c.bf16 %v2135_v46, %v2134_v41  ;;  %v4113_v41 = vld [vmem:[#allocation6_spill] sm:$0xff] }
0x1016   :  { %v2138_v59 = vpack.c.bf16 %v2133_v12, %v2132_v1 }
0x1018   :  { %2956 = vmatprep.subr.bf16.mxu0 %v2138_v59 }
0x1019   :  { %2957 = vmatpush3.bf16.msra.mxu0 %v2138_v59  ;;  %v4114_v59 = vld [vmem:[#allocation9_spill] sm:$0xff] }
0x101a   :  { %2958 = vmatprep.subr.bf16.mxu0 %v2139_v43 }
0x101d   :  { %2959 = vmatpush3.bf16.msra.mxu0 %v2139_v43 }
0x1020   :  { %2961 = vmatmul.mubr.msk.bf16.vlgmr.msra.gmra.mrb[56].mxu0 %vm325_vm1, %v3104_v13 }
0x1021   :  { %2982 = vmatprep.mubr.msk.bf16.mxu0 %vm325_vm1, %v3105_v47 }
0x10f3   :  { %v2962_v16 = vpop.f32.mrb[56].mxu0 }
0x10f4   :  { %v2174_v58 = vpop.f32.mrb[57].mxu0  ;;  %v2183_v52 = vadd.f32 %v2962_v16, %v4106_v23  ;;  %v3112_v23 = vld [vmem:[%s4026_s4 + $0x58] sm:$0xff]  }
0x10f5   :  { %v2175_v32 = vadd.f32 %v2174_v58, %v4104_v44  ;;  %v2963_v8 = vpop.f32.mrb[58].mxu0  ;;  %v4115_v58 = vld [vmem:[#allocation7_spill] sm:$0xff] }
0x10f6   :  { %v2177_v14 = vpop.f32.mrb[59].mxu0  ;;  %v2186_v62 = vadd.f32 %v2963_v8, %v4107_v26 }
0x10f7   :  { %3080 = vtanh.f32 %v2175_v32  ;;  %v2178_v9 = vadd.f32 %v2177_v14, %v4105_v0 }
0x10f9   :  { %3082 = vtanh.f32 %v2178_v9 }
0x1101   :  { %v3081_v19 = vpop.eup %3080 }
0x1102   :  { %v2191_v39 = vmul.f32 1.442695, %v3081_v19 }
0x1103   :  { %v3083_v51 = vpop.eup %3082 }
0x1104   :  { %3084 = vpow2.f32 %v2191_v39  ;;  %v2193_v60 = vmul.f32 1.442695, %v3083_v51 }
0x1106   :  { %3086 = vpow2.f32 %v2193_v60  ;;  %v3110_v60 = vld [vmem:[%s4026_s4 + $0x48] sm:$0xff]  }
0x110e   :  { %v3085_v57 = vpop.eup %3084 }
0x110f   :  { %v2195_v53 = vmul.f32 %v3085_v57, %v3878_v37  ;;  %v3111_v57 = vld [vmem:[%s4026_s4 + $0x50] sm:$0xff]  }
0x1110   :  { %v3087_v28 = vpop.eup %3086 }
0x1111   :  { %v2196_v22 = vmul.f32 %v3087_v28, %v3875_v31  ;;  %v2197_v33 = vadd.f32 %v2195_v53, %v2183_v52  ;;  %v3106_v31 = vld [vmem:[%s4022_s2 + $0x48] sm:$0xff]   ;;  %v4116_v53 = vld [vmem:[#allocation12_spill] sm:$0xff] }
0x1113   :  { %v2198_v54 = vadd.f32 %v2196_v22, %v2186_v62  ;;  %v2199_v18 = vmul.f32 0.0, %v2197_v33  ;;  %v4117_v62 = vld [vmem:[#allocation10_spill] sm:$0xff] }
0x1115   :  { %v3946_v10 = vadd.f32 %v2199_v18, %v3878_v37  ;;  %v3949_v35 = vadd.f32 %v2198_v54, %v3881_v45  ;;  %v3107_v37 = vld [vmem:[%s4022_s2 + $0x50] sm:$0xff]   ;;  %v3108_v45 = vld [vmem:[%s4022_s2 + $0x58] sm:$0xff]   ;;  %v4118_v18 = vld [vmem:[#allocation13_spill] sm:$0xff] }
0x1117   :  { %v3952_v17 = vmul.f32 0.0, %v3946_v10 }
0x1119   :  { %v2205_v3 = vpack.c.bf16 %v3949_v35, %v3952_v17 }
0x111b   :  { %2964 = vmatprep.subr.bf16.mxu1 %v2205_v3 }
0x111c   :  { %2965 = vmatpush3.bf16.msra.mxu1 %v2205_v3 }
0x111f   :  { %2967 = vmatmul.mubr.msk.bf16.vlgmr.msra.gmra.mrb[52].mxu1 %vm149_vm0, %v3106_v31 }
0x1120   :  { %2970 = vmatprep.mubr.msk.bf16.mxu1 %vm149_vm0, %v3107_v37 }
0x1127   :  { %2971 = vmatmul.mubr.msk.bf16.gmra.mrb[56].mxu1 %vm149_vm0, %v3108_v45  ;;  %v4119_v45 = vld [vmem:[#allocation11_spill] sm:$0xff] }
0x1128   :  { %2998 = vmatprep.mubr.msk.bf16.mxu1 %vm325_vm1, %v3109_v27 }
0x11f2   :  { %v2968_v5 = vpop.f32.mrb[52].mxu1 }
0x11f3   :  { %v2249_v55 = vadd.f32 %v2968_v5, %v4108_v36  ;;  %v2240_v34 = vpop.f32.mrb[53].mxu1 }
0x11f4   :  { %v2241_v20 = vadd.f32 %v2240_v34, %v4109_v24  ;;  %v2969_v29 = vpop.f32.mrb[54].mxu1 }
0x11f5   :  { %v2273_v7 = vmul.f32 0.01, %v2249_v55  ;;  %v2252_v61 = vadd.f32 %v2969_v29, %v4110_v50  ;;  %v2243_v11 = vpop.f32.mrb[55].mxu1 }
0x11f6   :  { %v2271_v38 = vmul.f32 0.01, %v2241_v20  ;;  %v2244_v40 = vadd.f32 %v2243_v11, %v4111_v25 }
0x11f7   :  { %v2274_v6 = vmul.f32 0.01, %v2252_v61  ;;  %v2281_v63 = vmax.f32 %v2249_v55, %v2273_v7  ;;  %v4120_v7 = vld [vmem:[#allocation16_spill] sm:$0xff] }
0x11f8   :  { %v2272_v42 = vmul.f32 0.01, %v2244_v40  ;;  %v2279_v2 = vmax.f32 %v2241_v20, %v2271_v38  ;;  %v4121_v38 = vld [vmem:[#allocation14_spill] sm:$0xff] }
0x11f9   :  { %v2282_v30 = vmax.f32 %v2252_v61, %v2274_v6 }
0x11fa   :  { %v2280_v48 = vmax.f32 %v2244_v40, %v2272_v42  ;;  %v2972_v4 = vpop.f32.mrb[56].mxu1 }
0x11fb   :  { %v2265_v21 = vadd.f32 %v2972_v4, %v4112_v15  ;;  %v2256_v49 = vpop.f32.mrb[57].mxu1  ;;  %v2288_v56 = vpack.c.bf16 %v2282_v30, %v2281_v63  ;;  %v4122_v63 = vld [vmem:[#allocation17_spill] sm:$0xff]  ;;  %v4123_v4 = vld [vmem:[#allocation15_spill] sm:$0xff] }
0x11fc   :  { %v2257_v46 = vadd.f32 %v2256_v49, %v4113_v41  ;;  %v2973_v1 = vpop.f32.mrb[58].mxu1  ;;  %v2287_v12 = vpack.c.bf16 %v2280_v48, %v2279_v2 }
0x11fd   :  { %v2277_v43 = vmul.f32 0.01, %v2265_v21  ;;  %v2268_v13 = vadd.f32 %v2973_v1, %v4114_v59  ;;  %v2259_v47 = vpop.f32.mrb[59].mxu1  ;;  %v3113_v59 = vld [vmem:[%s4029_s6 + $0x28] sm:$0xff]  }
0x11fe   :  { %v2275_v16 = vmul.f32 0.01, %v2257_v46  ;;  %v2260_v44 = vadd.f32 %v2259_v47, %v4115_v58  ;;  %2974 = vmatprep.subr.bf16.mxu0 %v2287_v12 }
0x11ff   :  { %v2278_v32 = vmul.f32 0.01, %v2268_v13  ;;  %2975 = vmatpush3.bf16.msra.mxu0 %v2287_v12  ;;  %v2285_v14 = vmax.f32 %v2265_v21, %v2277_v43 }
0x1200   :  { %v2276_v8 = vmul.f32 0.01, %v2260_v44  ;;  %2976 = vmatprep.subr.bf16.mxu0 %v2288_v56  ;;  %v2283_v9 = vmax.f32 %v2257_v46, %v2275_v16  ;;  %v4124_v16 = vld [vmem:[#allocation18_spill] sm:$0xff] }
0x1201   :  { %v2286_v0 = vmax.f32 %v2268_v13, %v2278_v32 }
0x1202   :  { %v2284_v19 = vmax.f32 %v2260_v44, %v2276_v8  ;;  %v4125_v8 = vld [vmem:[#allocation19_spill] sm:$0xff] }
0x1203   :  { %2977 = vmatpush3.bf16.msra.mxu0 %v2288_v56  ;;  %v2290_v39 = vpack.c.bf16 %v2286_v0, %v2285_v14 }
0x1204   :  { %v2289_v51 = vpack.c.bf16 %v2284_v19, %v2283_v9 }
0x1206   :  { %2978 = vmatprep.subr.bf16.mxu0 %v2289_v51 }
0x1207   :  { %2979 = vmatpush3.bf16.msra.mxu0 %v2289_v51 }
0x1208   :  { %2980 = vmatprep.subr.bf16.mxu0 %v2290_v39 }
0x120b   :  { %2981 = vmatpush3.bf16.msra.mxu0 %v2290_v39 }
0x120e   :  { %2983 = vmatmul.mubr.msk.bf16.vlgmr.msra.gmra.mrb[60].mxu0 %vm325_vm1, %v3110_v60  ;;  %v4126_v60 = vld [vmem:[#allocation21_spill] sm:$0xff] }
0x120f   :  { %2986 = vmatprep.mubr.msk.bf16.mxu0 %vm325_vm1, %v3111_v57 }
0x1216   :  { %2987 = vmatmul.mubr.msk.bf16.gmra.mrb[64].mxu0 %vm325_vm1, %v3112_v23 }
0x12e1   :  { %v2984_v52 = vpop.f32.mrb[60].mxu0 }
0x12e2   :  { %v2334_v28 = vadd.f32 %v2984_v52, %v4116_v53  ;;  %v2325_v26 = vpop.f32.mrb[61].mxu0 }
0x12e3   :  { %v2326_v22 = vadd.f32 %v2325_v26, %v4117_v62  ;;  %v2985_v33 = vpop.f32.mrb[62].mxu0 }
0x12e4   :  { %v2358_v54 = vmul.f32 0.01, %v2334_v28  ;;  %v2337_v3 = vadd.f32 %v2985_v33, %v4118_v18  ;;  %v2328_v31 = vpop.f32.mrb[63].mxu0 }
0x12e5   :  { %v2356_v37 = vmul.f32 0.01, %v2326_v22  ;;  %v2329_v27 = vadd.f32 %v2328_v31, %v4119_v45 }
0x12e6   :  { %v2359_v5 = vmul.f32 0.01, %v2337_v3  ;;  %v2366_v55 = vmax.f32 %v2334_v28, %v2358_v54  ;;  %v4127_v28 = vld [vmem:[#allocation20_spill] sm:$0xff] }
0x12e7   :  { %v2357_v36 = vmul.f32 0.01, %v2329_v27  ;;  %v2364_v24 = vmax.f32 %v2326_v22, %v2356_v37 }
0x12e8   :  { %v2367_v34 = vmax.f32 %v2337_v3, %v2359_v5 }
0x12e9   :  { %v2365_v20 = vmax.f32 %v2329_v27, %v2357_v36  ;;  %v2988_v29 = vpop.f32.mrb[64].mxu0 }
0x12ea   :  { %v2350_v50 = vadd.f32 %v2988_v29, %v4120_v7  ;;  %v2341_v61 = vpop.f32.mrb[65].mxu0  ;;  %v2373_v11 = vpack.c.bf16 %v2367_v34, %v2366_v55 }
0x12eb   :  { %v2342_v25 = vadd.f32 %v2341_v61, %v4121_v38  ;;  %v2989_v40 = vpop.f32.mrb[66].mxu0  ;;  %v2372_v6 = vpack.c.bf16 %v2365_v20, %v2364_v24 }
0x12ec   :  { %v2362_v42 = vmul.f32 0.01, %v2350_v50  ;;  %v2353_v30 = vadd.f32 %v2989_v40, %v4122_v63  ;;  %v2344_v2 = vpop.f32.mrb[67].mxu0 }
0x12ed   :  { %v2360_v48 = vmul.f32 0.01, %v2342_v25  ;;  %v2345_v15 = vadd.f32 %v2344_v2, %v4123_v4  ;;  %2990 = vmatprep.subr.bf16.mxu1 %v2372_v6 }
0x12ee   :  { %v2363_v21 = vmul.f32 0.01, %v2353_v30  ;;  %2991 = vmatpush3.bf16.msra.mxu1 %v2372_v6  ;;  %v2370_v56 = vmax.f32 %v2350_v50, %v2362_v42 }
0x12ef   :  { %v2361_v49 = vmul.f32 0.01, %v2345_v15  ;;  %2992 = vmatprep.subr.bf16.mxu1 %v2373_v11  ;;  %v2368_v46 = vmax.f32 %v2342_v25, %v2360_v48 }
0x12f0   :  { %v2371_v41 = vmax.f32 %v2353_v30, %v2363_v21 }
0x12f1   :  { %v2369_v1 = vmax.f32 %v2345_v15, %v2361_v49 }
0x12f2   :  { %2993 = vmatpush3.bf16.msra.mxu1 %v2373_v11  ;;  %v2375_v12 = vpack.c.bf16 %v2371_v41, %v2370_v56 }
0x12f3   :  { %v2374_v43 = vpack.c.bf16 %v2369_v1, %v2368_v46 }
0x12f5   :  { %2994 = vmatprep.subr.bf16.mxu1 %v2374_v43 }
0x12f6   :  { %2995 = vmatpush3.bf16.msra.mxu1 %v2374_v43 }
0x12f7   :  { %2996 = vmatprep.subr.bf16.mxu1 %v2375_v12 }
0x12fa   :  { %2997 = vmatpush3.bf16.msra.mxu1 %v2375_v12 }
0x12fd   :  { %2999 = vmatmul.mubr.msk.bf16.vlgmr.msra.gmra.mrb[60].mxu1 %vm325_vm1, %v3113_v59 }
0x13d0   :  { %v3000_v13 = vpop.f32.mrb[60].mxu1 }
0x13d1   :  { %v2410_v47 = vpop.f32.mrb[61].mxu1  ;;  %v2419_v57 = vadd.f32 %v3000_v13, %v4126_v60 }
0x13d2   :  { %v2411_v58 = vadd.f32 %v2410_v47, %v4124_v16  ;;  %v3001_v44 = vpop.f32.mrb[62].mxu1 }
0x13d3   :  { %v2413_v32 = vpop.f32.mrb[63].mxu1  ;;  %v2422_v26 = vadd.f32 %v3001_v44, %v4127_v28 }
0x13d4   :  { %3088 = vtanh.f32 %v2411_v58  ;;  %v2414_v14 = vadd.f32 %v2413_v32, %v4125_v8 }
0x13d6   :  { %3090 = vtanh.f32 %v2414_v14 }
0x13de   :  { %v3089_v0 = vpop.eup %3088 }
0x13df   :  { %v2427_v9 = vmul.f32 1.442695, %v3089_v0 }
0x13e0   :  { %v3091_v19 = vpop.eup %3090 }
0x13e1   :  { %3092 = vpow2.f32 %v2427_v9  ;;  %v2429_v39 = vmul.f32 1.442695, %v3091_v19 }
0x13e3   :  { %3094 = vpow2.f32 %v2429_v39 }
0x13eb   :  { %v3093_v51 = vpop.eup %3092 }
0x13ec   :  { %v2431_v23 = vmul.f32 %v3093_v51, %v3946_v10 }
0x13ed   :  { %v3095_v52 = vpop.eup %3094 }
0x13ee   :  { %v2433_v53 = vadd.f32 %v2431_v23, %v2419_v57  ;;  %v2432_v62 = vmul.f32 %v3095_v52, %v3949_v35 }
0x13f0   :  { %v2437_v22 = vadd.f32 %v2433_v53, %v3952_v17  ;;  %v2434_v33 = vadd.f32 %v2432_v62, %v2422_v26 }
0x13f2   :  { %2440 = vst.msk [vmem:[%s4031_s14] sm:$0xff] %vm2439_vm2, %v2437_v22  ;;  %v2436_v54 = vmul.f32 0.0, %v2434_v33 }
0x13f4   :  { %v2438_v18 = vadd.f32 %v2436_v54, %v3949_v35 }
0x13f6   :  { %2441 = vst.msk [vmem:[%s4031_s14 + $0x8] sm:$0xff] %vm2439_vm2, %v2438_v18 }

</bundles_post_ra>
